<compile_context>
chip_gen: v6e
topology: v6e:2x2x1
jax: 0.10.0
libtpu: 0.0.40
codegen_flags: <defaults>
</compile_context>

<pallas_src>
import functools

import jax
import jax.numpy as jnp
from jax.experimental import pallas as pl
from jax.experimental.pallas import tpu as pltpu


def _hardswish(x):
    # PyTorch Hardswish: x * relu6(x + 3) / 6
    return x * jnp.clip(x + 3.0, 0.0, 6.0) * (1.0 / 6.0)


def _round_up(v, m):
    return (v + m - 1) // m * m


# ---------- fused kernel: cv1 (1x1) + cv2 (3x3) + BN + Hardswish (+ add) ----------
def fused_bottleneck_kernel(x_hbm, w1_ref, w2_ref, s1_ref, b1_ref, s2_ref, b2_ref,
                            o_ref, x_buf, y1_buf, dma_sem, *, TH, H, W, add):
    """One grid step = one image (axis 0) x one tile of TH output rows (axis 1).

    x_hbm : (N, Hp+2, W, C1p) f32 in HBM (1 zero halo row top/bottom, ch-padded)
    w1_ref: (C1p, C_p) bf16        w2_ref: (9*C_p, C2p) bf16 (tap-major rows)
    s*/b* : (1, C) f32 folded BatchNorm scale/bias
    o_ref : (1, TH, W, C2p) f32
    x_buf : VMEM (TH+2, W, C1p) f32 scratch (halo tile of x)
    y1_buf: VMEM (TH+2, W+2, C_p) f32 scratch (cv1 output, zero W borders)
    """
    n = pl.program_id(0)
    t = pl.program_id(1)
    c1p = x_buf.shape[-1]
    c_p = w1_ref.shape[-1]
    c2p = o_ref.shape[-1]

    # ---- manual DMA: TH+2 halo rows of x for this tile (HBM -> VMEM) ----
    row0 = pl.multiple_of(t * TH, TH)
    cp = pltpu.make_async_copy(x_hbm.at[n, pl.ds(row0, TH + 2)], x_buf, dma_sem)
    cp.start()
    cp.wait()

    # ---- cv1: 1x1 conv (rows x channels matmul on MXU) + BN + Hardswish ----
    xm = x_buf[...].reshape((TH + 2) * W, c1p).astype(jnp.bfloat16)
    y = jnp.dot(xm, w1_ref[...], preferred_element_type=jnp.float32)
    y = _hardswish(y * s1_ref[...] + b1_ref[...])          # f32 epilogue
    y = y.reshape(TH + 2, W, c_p)

    # zero rows that correspond to the zero halo / ragged bottom padding
    g = t * TH + jax.lax.broadcasted_iota(jnp.int32, (TH + 2, 1, 1), 0)
    y = jnp.where((g >= 1) & (g <= H), y, 0.0)

    # stage y1 into the W-padded VMEM scratch (left/right columns stay zero)
    y1_buf[...] = jnp.zeros_like(y1_buf)
    y1_buf[:, pl.ds(1, W), :] = y

    # ---- cv2: 3x3 conv as ONE matmul with contraction dim 9*C_ ----
    taps = [y1_buf[pl.ds(ky, TH), pl.ds(kx, W), :]
            .reshape(TH * W, c_p).astype(jnp.bfloat16)
            for ky in range(3) for kx in range(3)]
    patch = jnp.concatenate(taps, axis=-1)                  # (TH*W, 9*C_p) bf16
    acc = jnp.dot(patch, w2_ref[...], preferred_element_type=jnp.float32)
    out = _hardswish(acc * s2_ref[...] + b2_ref[...])       # f32 epilogue

    if add:  # residual rows are already in VMEM (f32) - no extra HBM read
        out = out + x_buf[pl.ds(1, TH), :, :].reshape(TH * W, c2p)

    o_ref[...] = out.reshape(1, TH, W, c2p).astype(o_ref.dtype)


def bottleneck_pallas(x_nchw, p, *, shortcut=True):
    N, C1, H, W = x_nchw.shape
    w1p, w2p = p["w1p"], p["w2p"]
    C1p, C_p = w1p.shape
    C2p = w2p.shape[1]
    C2 = p["c2"]
    add = bool(shortcut and (C1 == C2))
    if add:
        assert C1p == C2p

    # TODO(synk): a full model port should stay NHWC end-to-end; this transpose
    #             pair exists only for the NCHW-facing test interface.
    x = jnp.transpose(x_nchw, (0, 2, 3, 1)).astype(jnp.float32)      # NHWC

    # Row-tile size (sweep per generation; bigger tiles for bigger W / VMEM).
    TH = 8 if H > 8 else H
    n_th = -(-H // TH)
    Hp = n_th * TH

    # 1 zero halo row top, (Hp-H)+1 zero rows bottom, channels padded to C1p.
    x_p = jnp.pad(x, ((0, 0), (1, Hp - H + 1), (0, 0), (0, C1p - C1)))

    kern = functools.partial(fused_bottleneck_kernel, TH=TH, H=H, W=W, add=add)

    out_p = pl.pallas_call(
        kern,
        out_shape=jax.ShapeDtypeStruct((N, Hp, W, C2p), jnp.float32),
        grid=(N, n_th),
        in_specs=[
            pl.BlockSpec(memory_space=pl.ANY),                     # x_p stays in HBM
            pl.BlockSpec((C1p, C_p), lambda n, t: (0, 0)),         # w1 (bf16)
            pl.BlockSpec((9 * C_p, C2p), lambda n, t: (0, 0)),     # w2 (bf16)
            pl.BlockSpec((1, C_p), lambda n, t: (0, 0)),           # s1
            pl.BlockSpec((1, C_p), lambda n, t: (0, 0)),           # b1
            pl.BlockSpec((1, C2p), lambda n, t: (0, 0)),           # s2
            pl.BlockSpec((1, C2p), lambda n, t: (0, 0)),           # b2
        ],
        out_specs=pl.BlockSpec((1, TH, W, C2p), lambda n, t: (n, t, 0, 0)),
        scratch_shapes=[
            pltpu.VMEM((TH + 2, W, C1p), jnp.float32),       # x halo tile
            pltpu.VMEM((TH + 2, W + 2, C_p), jnp.float32),   # cv1 output + W halo
            pltpu.SemaphoreType.DMA,
        ],
        compiler_params=pltpu.CompilerParams(
            dimension_semantics=("parallel", "parallel"),
            vmem_limit_bytes=32 * 1024 * 1024,   # re-derive when scaling TH (v7x: 64 MiB phys)
        ),
    )(x_p, w1p, w2p, p["s1"], p["b1"], p["s2"], p["b2"])

    out = out_p[:, :H, :, :C2]
    return jnp.transpose(out, (0, 3, 1, 2))                  # NHWC -> NCHW


# ---------------- deterministic parameter construction ----------------
def init_params(key, c1, c2, e=0.5):
    c_ = int(c2 * e)
    eps = 1e-5
    ks = jax.random.split(key, 10)
    # PyTorch-shaped conv weights (OIHW), no bias.
    w1_t = 0.1 * jax.random.normal(ks[0], (c_, c1, 1, 1), jnp.float32)
    w2_t = 0.1 * jax.random.normal(ks[1], (c2, c_, 3, 3), jnp.float32)
    # BatchNorm params + running stats.
    g1 = 1.0 + 0.1 * jax.random.normal(ks[2], (c_,), jnp.float32)
    be1 = 0.1 * jax.random.normal(ks[3], (c_,), jnp.float32)
    m1 = 0.1 * jax.random.normal(ks[4], (c_,), jnp.float32)
    v1 = jnp.abs(jax.random.normal(ks[5], (c_,), jnp.float32)) + 0.5
    g2 = 1.0 + 0.1 * jax.random.normal(ks[6], (c2,), jnp.float32)
    be2 = 0.1 * jax.random.normal(ks[7], (c2,), jnp.float32)
    m2 = 0.1 * jax.random.normal(ks[8], (c2,), jnp.float32)
    v2 = jnp.abs(jax.random.normal(ks[9], (c2,), jnp.float32)) + 0.5

    # Fold eval-mode BN into per-channel scale/bias.
    s1 = g1 / jnp.sqrt(v1 + eps)
    b1 = be1 - m1 * s1
    s2 = g2 / jnp.sqrt(v2 + eps)
    b2 = be2 - m2 * s2

    # Lane-dense padding of all channel dims to multiples of 128.
    c1p = _round_up(c1, 128)
    c_p = _round_up(c_, 128)
    c2p = _round_up(c2, 128)

    w1 = jnp.transpose(w1_t[:, :, 0, 0])                          # (c1, c_)
    w1p = jnp.zeros((c1p, c_p), jnp.float32).at[:c1, :c_].set(w1)
    w1p = w1p.astype(jnp.bfloat16)

    w2_hwio = jnp.transpose(w2_t, (2, 3, 1, 0))                   # (3,3,c_,c2)
    w2p = jnp.zeros((3, 3, c_p, c2p), jnp.float32).at[:, :, :c_, :c2].set(w2_hwio)
    w2p = w2p.reshape(9 * c_p, c2p).astype(jnp.bfloat16)          # tap-major rows

    def padvec(v, n):
        return jnp.zeros((1, n), jnp.float32).at[0, :v.shape[0]].set(v)

    return dict(
        w1p=w1p, w2p=w2p,
        s1=padvec(s1, c_p), b1=padvec(b1, c_p),
        s2=padvec(s2, c2p), b2=padvec(b2, c2p),
        c2=c2,
        torch=dict(w1=w1_t, w2=w2_t, g1=g1, be1=be1, m1=m1, v1=v1,
                   g2=g2, be2=be2, m2=m2, v2=v2, eps=eps),
    )


# ---------------- pure-JAX reference (mirrors PyTorch ops, f32) ----------------
def ref_forward(x, tp, shortcut=True):
    def conv_bn_hsw(x, w, g, be, m, v, eps, pad):
        y = jax.lax.conv_general_dilated(
            x, w, window_strides=(1, 1),
            padding=[(pad, pad), (pad, pad)],
            dimension_numbers=("NCHW", "OIHW", "NCHW"))
        y = (y - m[None, :, None, None]) / jnp.sqrt(v[None, :, None, None] + eps)
        y = y * g[None, :, None, None] + be[None, :, None, None]
        return _hardswish(y)

    y = conv_bn_hsw(x, tp["w1"], tp["g1"], tp["be1"], tp["m1"], tp["v1"],
                    tp["eps"], 0)
    y = conv_bn_hsw(y, tp["w2"], tp["g2"], tp["be2"], tp["m2"], tp["v2"],
                    tp["eps"], 1)
    return x + y if (shortcut and x.shape[1] == y.shape[1]) else y


if __name__ == "__main__":
    key = jax.random.PRNGKey(0)
    kx, kp = jax.random.split(key)

    N, C1, H, W = 2, 4, 16, 16
    C2 = 4                       # c1 == c2 and shortcut=True -> residual add
    x = jax.random.normal(kx, (N, C1, H, W), jnp.float32)
    params = init_params(kp, C1, C2, e=0.5)

    out = jax.block_until_ready(bottleneck_pallas(x, params, shortcut=True))
    ref = ref_forward(x, params["torch"], shortcut=True)
    assert out.shape == ref.shape == (N, C2, H, W)
    assert jnp.allclose(out, ref, atol=1e-2, rtol=1e-2), \
        float(jnp.max(jnp.abs(out - ref)))

    # also exercise the no-shortcut variant (separate static add=False kernel)
    out2 = jax.block_until_ready(bottleneck_pallas(x, params, shortcut=False))
    ref2 = ref_forward(x, params["torch"], shortcut=False)
    assert jnp.allclose(out2, ref2, atol=1e-2, rtol=1e-2), \
        float(jnp.max(jnp.abs(out2 - ref2)))

    print("KERNEL_OK")
</pallas_src>

<mosaic_0001>
module attributes {stable_mosaic.version = 11 : i64} {
  func.func @fused_bottleneck_kernel(%arg0: i32, %arg1: i32, %arg2: memref<2x18x16x128xf32, #tpu.memory_space<any>>, %arg3: memref<128x128xbf16, #tpu.memory_space<vmem>>, %arg4: memref<1152x128xbf16, #tpu.memory_space<vmem>>, %arg5: memref<1x128xf32, #tpu.memory_space<vmem>>, %arg6: memref<1x128xf32, #tpu.memory_space<vmem>>, %arg7: memref<1x128xf32, #tpu.memory_space<vmem>>, %arg8: memref<1x128xf32, #tpu.memory_space<vmem>>, %arg9: memref<1x8x16x128xf32, #tpu.memory_space<vmem>>, %arg10: memref<10x16x128xf32, #tpu.memory_space<vmem>>, %arg11: memref<10x18x128xf32, #tpu.memory_space<vmem>>, %arg12: memref<!tpu.dma_semaphore, #tpu.memory_space<semaphore_mem>>) attributes {dimension_semantics = [#tpu.dimension_semantics<parallel>, #tpu.dimension_semantics<parallel>], iteration_bounds = array<i64: 2, 2>, scalar_prefetch = 0 : i64, scratch_operands = 3 : i64, tpu.core_type = #tpu.core_type<tc>, window_params = [{}, {pipeline_mode = #tpu.pipeline_mode<synchronous>, transform_indices = @transform_1, window_bounds = array<i64: 128, 128>}, {pipeline_mode = #tpu.pipeline_mode<synchronous>, transform_indices = @transform_2, window_bounds = array<i64: 1152, 128>}, {pipeline_mode = #tpu.pipeline_mode<synchronous>, transform_indices = @transform_3, window_bounds = array<i64: 1, 128>}, {pipeline_mode = #tpu.pipeline_mode<synchronous>, transform_indices = @transform_4, window_bounds = array<i64: 1, 128>}, {pipeline_mode = #tpu.pipeline_mode<synchronous>, transform_indices = @transform_5, window_bounds = array<i64: 1, 128>}, {pipeline_mode = #tpu.pipeline_mode<synchronous>, transform_indices = @transform_6, window_bounds = array<i64: 1, 128>}, {transform_indices = @transform_7, window_bounds = array<i64: 1, 8, 16, 128>}]} {
    %c8_i32 = arith.constant 8 : i32
    %0 = arith.muli %arg1, %c8_i32 : i32
    %1 = tpu.assume_multiple %0, 8 : i32
    %c0_i32 = arith.constant 0 : i32
    %c0_i32_0 = arith.constant 0 : i32
    %2 = tpu.memref_slice %arg2[%arg0, %1, %c0_i32, %c0_i32_0] : memref<2x18x16x128xf32, #tpu.memory_space<any>> -> memref<1x10x16x128xf32, #tpu.memory_space<any>>
    %3 = tpu.memref_squeeze %2 : memref<1x10x16x128xf32, #tpu.memory_space<any>> -> memref<10x16x128xf32, #tpu.memory_space<any>>
    tpu.enqueue_dma source(%3 : memref<10x16x128xf32, #tpu.memory_space<any>>) target(%arg10 : memref<10x16x128xf32, #tpu.memory_space<vmem>>) target_semaphore(%arg12 : memref<!tpu.dma_semaphore, #tpu.memory_space<semaphore_mem>>)
    %c0_i32_1 = arith.constant 0 : i32
    %c0_i32_2 = arith.constant 0 : i32
    %4 = tpu.memref_slice %arg2[%arg0, %1, %c0_i32_1, %c0_i32_2] : memref<2x18x16x128xf32, #tpu.memory_space<any>> -> memref<1x10x16x128xf32, #tpu.memory_space<any>>
    %5 = tpu.memref_squeeze %4 : memref<1x10x16x128xf32, #tpu.memory_space<any>> -> memref<10x16x128xf32, #tpu.memory_space<any>>
    tpu.wait_dma2 semaphore(%arg12 : memref<!tpu.dma_semaphore, #tpu.memory_space<semaphore_mem>>) src(%5 : memref<10x16x128xf32, #tpu.memory_space<any>>) dst(%arg10 : memref<10x16x128xf32, #tpu.memory_space<vmem>>)
    %c0 = arith.constant 0 : index
    %c0_3 = arith.constant 0 : index
    %c0_4 = arith.constant 0 : index
    %6 = vector.load %arg10[%c0, %c0_3, %c0_4] : memref<10x16x128xf32, #tpu.memory_space<vmem>>, vector<10x16x128xf32>
    %7 = vector.shape_cast %6 : vector<10x16x128xf32> to vector<160x128xf32>
    %8 = arith.truncf %7 : vector<160x128xf32> to vector<160x128xbf16>
    %c0_5 = arith.constant 0 : index
    %c0_6 = arith.constant 0 : index
    %9 = vector.load %arg3[%c0_5, %c0_6] : memref<128x128xbf16, #tpu.memory_space<vmem>>, vector<128x128xbf16>
    %cst = arith.constant dense<0.000000e+00> : vector<160x128xf32>
    %10 = tpu.matmul %8, %9, %cst {dimension_numbers = #tpu.dot_dimension_numbers<[1], [0], [0], [1], [0, 0, 1, 1], [], []>} : vector<160x128xbf16>, vector<128x128xbf16>, vector<160x128xf32> -> vector<160x128xf32>
    %c0_7 = arith.constant 0 : index
    %c0_8 = arith.constant 0 : index
    %11 = vector.load %arg5[%c0_7, %c0_8] : memref<1x128xf32, #tpu.memory_space<vmem>>, vector<1x128xf32>
    %12 = vector.broadcast %11 : vector<1x128xf32> to vector<160x128xf32>
    %13 = arith.mulf %10, %12 : vector<160x128xf32>
    %c0_9 = arith.constant 0 : index
    %c0_10 = arith.constant 0 : index
    %14 = vector.load %arg6[%c0_9, %c0_10] : memref<1x128xf32, #tpu.memory_space<vmem>>, vector<1x128xf32>
    %15 = vector.broadcast %14 : vector<1x128xf32> to vector<160x128xf32>
    %16 = arith.addf %13, %15 : vector<160x128xf32>
    %cst_11 = arith.constant 3.000000e+00 : f32
    %17 = vector.broadcast %cst_11 : f32 to vector<160x128xf32>
    %18 = arith.addf %16, %17 : vector<160x128xf32>
    %cst_12 = arith.constant 0.000000e+00 : f32
    %cst_13 = arith.constant 6.000000e+00 : f32
    %19 = vector.broadcast %cst_12 : f32 to vector<160x128xf32>
    %20 = arith.maximumf %19, %18 : vector<160x128xf32>
    %21 = vector.broadcast %cst_13 : f32 to vector<160x128xf32>
    %22 = arith.minimumf %21, %20 : vector<160x128xf32>
    %23 = arith.mulf %16, %22 : vector<160x128xf32>
    %cst_14 = arith.constant 0.166666672 : f32
    %24 = vector.broadcast %cst_14 : f32 to vector<160x128xf32>
    %25 = arith.mulf %23, %24 : vector<160x128xf32>
    %26 = vector.shape_cast %25 : vector<160x128xf32> to vector<10x16x128xf32>
    %c8_i32_15 = arith.constant 8 : i32
    %27 = arith.muli %arg1, %c8_i32_15 : i32
    %28 = tpu.iota {dimensions = array<i32: 0>} : vector<10x1x1xi32>
    %29 = vector.broadcast %27 : i32 to vector<10x1x1xi32>
    %30 = arith.addi %29, %28 : vector<10x1x1xi32>
    %c1_i32 = arith.constant 1 : i32
    %31 = vector.broadcast %c1_i32 : i32 to vector<10x1x1xi32>
    %32 = arith.cmpi sge, %30, %31 : vector<10x1x1xi32>
    %c16_i32 = arith.constant 16 : i32
    %33 = vector.broadcast %c16_i32 : i32 to vector<10x1x1xi32>
    %34 = arith.cmpi sle, %30, %33 : vector<10x1x1xi32>
    %35 = arith.andi %32, %34 : vector<10x1x1xi1>
    %cst_16 = arith.constant 0.000000e+00 : f32
    %36 = vector.shape_cast %35 : vector<10x1x1xi1> to vector<10x1x1xi1>
    %37 = vector.broadcast %36 : vector<10x1x1xi1> to vector<10x16x128xi1>
    %38 = vector.broadcast %cst_16 : f32 to vector<10x16x128xf32>
    %39 = arith.select %37, %26, %38 : vector<10x16x128xi1>, vector<10x16x128xf32>
    %cst_17 = arith.constant 0.000000e+00 : f32
    %40 = vector.broadcast %cst_17 : f32 to vector<10x18x128xf32>
    %c0_18 = arith.constant 0 : index
    %c0_19 = arith.constant 0 : index
    %c0_20 = arith.constant 0 : index
    %41 = vector.load %arg11[%c0_18, %c0_19, %c0_20] : memref<10x18x128xf32, #tpu.memory_space<vmem>>, vector<10x18x128xf32>
    tpu.vector_store %arg11[%c0_18, %c0_19, %c0_20], %40 {strides = array<i32>} : memref<10x18x128xf32, #tpu.memory_space<vmem>>, vector<10x18x128xf32>,
    %c0_21 = arith.constant 0 : index
    %c1 = arith.constant 1 : index
    %c0_22 = arith.constant 0 : index
    %42 = vector.load %arg11[%c0_21, %c1, %c0_22] : memref<10x18x128xf32, #tpu.memory_space<vmem>>, vector<10x16x128xf32>
    tpu.vector_store %arg11[%c0_21, %c1, %c0_22], %39 {strides = array<i32>} : memref<10x18x128xf32, #tpu.memory_space<vmem>>, vector<10x16x128xf32>,
    %c0_23 = arith.constant 0 : index
    %c0_24 = arith.constant 0 : index
    %c0_25 = arith.constant 0 : index
    %43 = vector.load %arg11[%c0_23, %c0_24, %c0_25] : memref<10x18x128xf32, #tpu.memory_space<vmem>>, vector<8x16x128xf32>
    %44 = vector.shape_cast %43 : vector<8x16x128xf32> to vector<128x128xf32>
    %45 = arith.truncf %44 : vector<128x128xf32> to vector<128x128xbf16>
    %c0_26 = arith.constant 0 : index
    %c1_27 = arith.constant 1 : index
    %c0_28 = arith.constant 0 : index
    %46 = vector.load %arg11[%c0_26, %c1_27, %c0_28] : memref<10x18x128xf32, #tpu.memory_space<vmem>>, vector<8x16x128xf32>
    %47 = vector.shape_cast %46 : vector<8x16x128xf32> to vector<128x128xf32>
    %48 = arith.truncf %47 : vector<128x128xf32> to vector<128x128xbf16>
    %c0_29 = arith.constant 0 : index
    %c2 = arith.constant 2 : index
    %c0_30 = arith.constant 0 : index
    %49 = vector.load %arg11[%c0_29, %c2, %c0_30] : memref<10x18x128xf32, #tpu.memory_space<vmem>>, vector<8x16x128xf32>
    %50 = vector.shape_cast %49 : vector<8x16x128xf32> to vector<128x128xf32>
    %51 = arith.truncf %50 : vector<128x128xf32> to vector<128x128xbf16>
    %c1_31 = arith.constant 1 : index
    %c0_32 = arith.constant 0 : index
    %c0_33 = arith.constant 0 : index
    %52 = vector.load %arg11[%c1_31, %c0_32, %c0_33] : memref<10x18x128xf32, #tpu.memory_space<vmem>>, vector<8x16x128xf32>
    %53 = vector.shape_cast %52 : vector<8x16x128xf32> to vector<128x128xf32>
    %54 = arith.truncf %53 : vector<128x128xf32> to vector<128x128xbf16>
    %c1_34 = arith.constant 1 : index
    %c1_35 = arith.constant 1 : index
    %c0_36 = arith.constant 0 : index
    %55 = vector.load %arg11[%c1_34, %c1_35, %c0_36] : memref<10x18x128xf32, #tpu.memory_space<vmem>>, vector<8x16x128xf32>
    %56 = vector.shape_cast %55 : vector<8x16x128xf32> to vector<128x128xf32>
    %57 = arith.truncf %56 : vector<128x128xf32> to vector<128x128xbf16>
    %c1_37 = arith.constant 1 : index
    %c2_38 = arith.constant 2 : index
    %c0_39 = arith.constant 0 : index
    %58 = vector.load %arg11[%c1_37, %c2_38, %c0_39] : memref<10x18x128xf32, #tpu.memory_space<vmem>>, vector<8x16x128xf32>
    %59 = vector.shape_cast %58 : vector<8x16x128xf32> to vector<128x128xf32>
    %60 = arith.truncf %59 : vector<128x128xf32> to vector<128x128xbf16>
    %c2_40 = arith.constant 2 : index
    %c0_41 = arith.constant 0 : index
    %c0_42 = arith.constant 0 : index
    %61 = vector.load %arg11[%c2_40, %c0_41, %c0_42] : memref<10x18x128xf32, #tpu.memory_space<vmem>>, vector<8x16x128xf32>
    %62 = vector.shape_cast %61 : vector<8x16x128xf32> to vector<128x128xf32>
    %63 = arith.truncf %62 : vector<128x128xf32> to vector<128x128xbf16>
    %c2_43 = arith.constant 2 : index
    %c1_44 = arith.constant 1 : index
    %c0_45 = arith.constant 0 : index
    %64 = vector.load %arg11[%c2_43, %c1_44, %c0_45] : memref<10x18x128xf32, #tpu.memory_space<vmem>>, vector<8x16x128xf32>
    %65 = vector.shape_cast %64 : vector<8x16x128xf32> to vector<128x128xf32>
    %66 = arith.truncf %65 : vector<128x128xf32> to vector<128x128xbf16>
    %c2_46 = arith.constant 2 : index
    %c2_47 = arith.constant 2 : index
    %c0_48 = arith.constant 0 : index
    %67 = vector.load %arg11[%c2_46, %c2_47, %c0_48] : memref<10x18x128xf32, #tpu.memory_space<vmem>>, vector<8x16x128xf32>
    %68 = vector.shape_cast %67 : vector<8x16x128xf32> to vector<128x128xf32>
    %69 = arith.truncf %68 : vector<128x128xf32> to vector<128x128xbf16>
    %70 = tpu.concatenate %45, %48, %51, %54, %57, %60, %63, %66, %69 in 1 : vector<128x128xbf16>, vector<128x128xbf16>, vector<128x128xbf16>, vector<128x128xbf16>, vector<128x128xbf16>, vector<128x128xbf16>, vector<128x128xbf16>, vector<128x128xbf16>, vector<128x128xbf16> -> vector<128x1152xbf16>
    %c0_49 = arith.constant 0 : index
    %c0_50 = arith.constant 0 : index
    %71 = vector.load %arg4[%c0_49, %c0_50] : memref<1152x128xbf16, #tpu.memory_space<vmem>>, vector<1152x128xbf16>
    %cst_51 = arith.constant dense<0.000000e+00> : vector<128x128xf32>
    %72 = tpu.matmul %70, %71, %cst_51 {dimension_numbers = #tpu.dot_dimension_numbers<[1], [0], [0], [1], [0, 0, 1, 1], [], []>} : vector<128x1152xbf16>, vector<1152x128xbf16>, vector<128x128xf32> -> vector<128x128xf32>
    %c0_52 = arith.constant 0 : index
    %c0_53 = arith.constant 0 : index
    %73 = vector.load %arg7[%c0_52, %c0_53] : memref<1x128xf32, #tpu.memory_space<vmem>>, vector<1x128xf32>
    %74 = vector.broadcast %73 : vector<1x128xf32> to vector<128x128xf32>
    %75 = arith.mulf %72, %74 : vector<128x128xf32>
    %c0_54 = arith.constant 0 : index
    %c0_55 = arith.constant 0 : index
    %76 = vector.load %arg8[%c0_54, %c0_55] : memref<1x128xf32, #tpu.memory_space<vmem>>, vector<1x128xf32>
    %77 = vector.broadcast %76 : vector<1x128xf32> to vector<128x128xf32>
    %78 = arith.addf %75, %77 : vector<128x128xf32>
    %cst_56 = arith.constant 3.000000e+00 : f32
    %79 = vector.broadcast %cst_56 : f32 to vector<128x128xf32>
    %80 = arith.addf %78, %79 : vector<128x128xf32>
    %cst_57 = arith.constant 0.000000e+00 : f32
    %cst_58 = arith.constant 6.000000e+00 : f32
    %81 = vector.broadcast %cst_57 : f32 to vector<128x128xf32>
    %82 = arith.maximumf %81, %80 : vector<128x128xf32>
    %83 = vector.broadcast %cst_58 : f32 to vector<128x128xf32>
    %84 = arith.minimumf %83, %82 : vector<128x128xf32>
    %85 = arith.mulf %78, %84 : vector<128x128xf32>
    %cst_59 = arith.constant 0.166666672 : f32
    %86 = vector.broadcast %cst_59 : f32 to vector<128x128xf32>
    %87 = arith.mulf %85, %86 : vector<128x128xf32>
    %c1_60 = arith.constant 1 : index
    %c0_61 = arith.constant 0 : index
    %c0_62 = arith.constant 0 : index
    %88 = vector.load %arg10[%c1_60, %c0_61, %c0_62] : memref<10x16x128xf32, #tpu.memory_space<vmem>>, vector<8x16x128xf32>
    %89 = vector.shape_cast %88 : vector<8x16x128xf32> to vector<128x128xf32>
    %90 = arith.addf %87, %89 : vector<128x128xf32>
    %91 = vector.shape_cast %90 : vector<128x128xf32> to vector<1x8x16x128xf32>
    %c0_63 = arith.constant 0 : index
    %c0_64 = arith.constant 0 : index
    %c0_65 = arith.constant 0 : index
    %c0_66 = arith.constant 0 : index
    %92 = vector.load %arg9[%c0_63, %c0_64, %c0_65, %c0_66] : memref<1x8x16x128xf32, #tpu.memory_space<vmem>>, vector<1x8x16x128xf32>
    tpu.vector_store %arg9[%c0_63, %c0_64, %c0_65, %c0_66], %91 {strides = array<i32>} : memref<1x8x16x128xf32, #tpu.memory_space<vmem>>, vector<1x8x16x128xf32>,
    return
  }
  func.func @transform_1(%arg0: i32, %arg1: i32) -> (i32, i32) {
    %c0_i32 = arith.constant 0 : i32
    %c0_i32_0 = arith.constant 0 : i32
    %c0_i32_1 = arith.constant 0 : i32
    return %c0_i32, %c0_i32_0 : i32, i32
  }
  func.func @transform_2(%arg0: i32, %arg1: i32) -> (i32, i32) {
    %c0_i32 = arith.constant 0 : i32
    %c0_i32_0 = arith.constant 0 : i32
    %c0_i32_1 = arith.constant 0 : i32
    return %c0_i32, %c0_i32_0 : i32, i32
  }
  func.func @transform_3(%arg0: i32, %arg1: i32) -> (i32, i32) {
    %c0_i32 = arith.constant 0 : i32
    %c0_i32_0 = arith.constant 0 : i32
    %c0_i32_1 = arith.constant 0 : i32
    return %c0_i32, %c0_i32_0 : i32, i32
  }
  func.func @transform_4(%arg0: i32, %arg1: i32) -> (i32, i32) {
    %c0_i32 = arith.constant 0 : i32
    %c0_i32_0 = arith.constant 0 : i32
    %c0_i32_1 = arith.constant 0 : i32
    return %c0_i32, %c0_i32_0 : i32, i32
  }
  func.func @transform_5(%arg0: i32, %arg1: i32) -> (i32, i32) {
    %c0_i32 = arith.constant 0 : i32
    %c0_i32_0 = arith.constant 0 : i32
    %c0_i32_1 = arith.constant 0 : i32
    return %c0_i32, %c0_i32_0 : i32, i32
  }
  func.func @transform_6(%arg0: i32, %arg1: i32) -> (i32, i32) {
    %c0_i32 = arith.constant 0 : i32
    %c0_i32_0 = arith.constant 0 : i32
    %c0_i32_1 = arith.constant 0 : i32
    return %c0_i32, %c0_i32_0 : i32, i32
  }
  func.func @transform_7(%arg0: i32, %arg1: i32) -> (i32, i32, i32, i32) {
    %c0_i32 = arith.constant 0 : i32
    %c0_i32_0 = arith.constant 0 : i32
    %c0_i32_1 = arith.constant 0 : i32
    return %arg0, %arg1, %c0_i32, %c0_i32_0 : i32, i32, i32, i32
  }
}

</mosaic_0001>

<bundles_post_ra>
// kernel: tpu_custom_call.1
= control target key start
LH: loop header
LB: loop body
LE: loop exit
PB: predicated region body
PF: predicated region fallthrough
CT: control target
= control target key end

     0   :  { %s4176_s0 = inlined_call_operand.hbm [shape: f32[2,18,16,128], index: 0, kind: input, shape index: {}]   ;;  %s4177_s1 = inlined_call_operand.hbm [shape: bf16[128,128], index: 1, kind: input, shape index: {}]   ;;  %s4178_s2 = inlined_call_operand.hbm [shape: bf16[1152,128], index: 2, kind: input, shape index: {}]   ;;  %s4179_s3 = inlined_call_operand.vmem [shape: f32[1,128], index: 3, kind: input, shape index: {}]   ;;  %s4180_s4 = inlined_call_operand.vmem [shape: f32[1,128], index: 4, kind: input, shape index: {}]   ;;  %s4181_s5 = inlined_call_operand.vmem [shape: f32[1,128], index: 5, kind: input, shape index: {}]   ;;  %s4182_s6 = inlined_call_operand.vmem [shape: f32[1,128], index: 6, kind: input, shape index: {}]   ;;  %s4183_s7 = inlined_call_operand.hbm [shape: f32[2,16,16,128], index: 7, kind: output, shape index: {}]  }
   0x1   :  { %4188 = sst [smem:[#allocation45_spill]] %s4177_s1 }
   0x2   :  { %4189 = sst [smem:[#allocation46_spill]] %s4178_s2 }
   0x3   :  { %12 = vsyncpa [#allocation6], 0 }
   0x4   :  { %13 = vsyncpa [#allocation9], 0 }
   0x5   :  { %14 = vsyncpa [#allocation7], 0 }
   0x6   :  { %16 = vsyncpa [#allocation7 + $0x1], 0  ;;  %s3290_s24 = smov 0   ;;  %s3292_s25 = smov 0  }
   0x7   :  { %s3294_s26 = smov 0   ;;  %s3296_s27 = smov 0  }
   0x8   :  { %s3298_s28 = smov 0   ;;  %s3300_s29 = smov 0  }
   0x9   :  { %s3302_s30 = smov 0   ;;  %s3304_s8 = smov 0  }
   0xa LB: > { %4190 = sst [smem:[#allocation19_spill]] %s3230_s29  ;;  %s2357_s9 = sadd.s32 4294967295, %s3238_s8   ;;  %s3238_s8 = sphi %s3304_s8, %s22_s8   ;;  %s3234_s30 = sphi %s3302_s30, %s4275_s30   ;;  %s3230_s29 = sphi %s3300_s29, %s4274_s29   ;;  %s3226_s28 = sphi %s3298_s28, %s4273_s28   ;;  %s3222_s27 = sphi %s3296_s27, %s4272_s27   ;;  %s3218_s26 = sphi %s3294_s26, %s4278_s26   ;;  %s3214_s25 = sphi %s3292_s25, %s4277_s25   ;;  %s3210_s24 = sphi %s3290_s24, %s4276_s24  }
   0xb   : > { %4191 = sst [smem:[#allocation20_spill]] %s3234_s30  ;;  %s2358_s10 = sadd.s32 4294967294, %s3238_s8  }
   0xc   : > { %s31_s11 = sadd.s32 1, %s3230_s29  ;;  %s34_s12 = sadd.s32 1, %s3234_s30 }
   0xd   : > { %p32_p0 = scmp.ge.s32.totalorder %s31_s11, 2  ;;  %s169_s13 = sadd.s32 1, %s3218_s26 }
   0xe   : > { %p179_p1 = scmp.ne.s32.totalorder %s3218_s26, %s3214_s25  ;;  %p180_p2 = scmp.eq.s32.totalorder %s2357_s9, 3 }
   0xf   : > { %s4280_s11 = smov (%p32_p0, %s31_s11), 0  ;;  %s4282_s12 = smov (!%p32_p0, %s34_s12), %s3234_s30 }
  0x10   : > { %4192 = sst [smem:[#allocation21_spill]] %s4280_s11  ;;  %s165_s14 = ssub.s32 %s3230_s29, %s4280_s11 }
  0x11   : > { %p3342_p3 = por %p180_p2, %p179_p1  ;;  %p36_p4 = scmp.ge.s32.totalorder %s4282_s12, 2 }
  0x12   : > { %p185_p5 = scmp.ne.s32.totalorder %s3214_s25, %s3210_s24  ;;  %p186_p6 = scmp.eq.s32.totalorder %s2358_s10, 3 }
  0x13   : > { %p2359_p7 = scmp.ge.s32.totalorder %s3238_s8, 1  ;;  %s4284_s12 = smov (%p36_p4, %s4282_s12), 0 }
  0x14   : > { %4194 = sst [smem:[#allocation22_spill]] %s4284_s12  ;;  %p3351_p8 = por %p186_p6, %p185_p5 }
  0x15   : > { %p193_p9 = scmp.lt.s32.totalorder %s3238_s8, 5  ;;  %s164_s17 = ssub.s32 %s3234_s30, %s4284_s12 }
  0x16   : > { %s166_s18 = sor.u32 %s165_s14, %s164_s17  ;;  %p3362_p12 = scmp.eq.s32.totalorder %s2357_s9, 0 }
  0x17   : > { %p3358_p10 = pnand %p2359_p7, %p193_p9  ;;  %p167_p11 = scmp.eq.s32.totalorder %s166_s18, 0 }
  0x18   : > { %s3240_s22 = smov [#allocation5]  }
  0x19   : > { %p2831_p13 = pneg %p3358_p10  ;;  %s205_s23 = sshll.u32 %s3240_s22, 4  ;;  %s206_s23 = int_to_ptr.vmem [resolvable:$true] %s205_s23 }
  0x1a   : > { %s3369_s21 = scalar_select %p167_p11, %s3218_s26, %s169_s13  }
  0x1b   : > { %p3373_p0 = pnand %p3362_p12, %p2831_p13  ;;  %s3073_s9 = scalar_lea.vmem %s206_s23, 1024 }
  0x1c   : > { %4198 = sst [smem:[#allocation23_spill]] %s3369_s21  ;;  %p3074_p2 = scmp.ne.s32.totalorder %s206_s23, %s3073_s9 }
  0x1d   : > { %p3064_p1 = pneg %p3373_p0  ;;  %p3081_p6 = scmp.lt.s32.totalorder %s206_s23, %s206_s23 }
  0x1e   : > { %p3082_p7 = scmp.lt.s32.totalorder %s3073_s9, %s3073_s9 }
  0x1f   : > { %p3076_p4 = pnand %p3074_p2, %p3064_p1 }
  0x20   : > { %p3083_p9 = por %p3082_p7, %p3081_p6 }
  0x21   : > { %p3077_p5 = pneg %p3076_p4 }
  0x23   : > { %p3084_p11 = pnand %p3083_p9, %p3077_p5 }
  0x25   : > { %3087 = shalt.err (!%p3084_p11)
}
  0x26   : > { %s3241_s13 = smov 64   ;;  %s3242_s14 = smov 4  }
  0x27   : > { %s4200_s1 = sld [smem:[#allocation45_spill]]  ;;  %s3243_s22 = smov [#allocation8]  }
  0x28   : > { %s218_s12 = sshll.u32 %s3243_s22, 4  ;;  %s219_s12 = int_to_ptr.vmem [resolvable:$true] %s218_s12 }
  0x29   : > { %s3099_s11 = scalar_lea.vmem %s219_s12, 9216  ;;  %p3107_p5 = scmp.lt.s32.totalorder %s219_s12, %s219_s12 }
  0x2a   : > { %p3100_p13 = scmp.ne.s32.totalorder %s219_s12, %s3099_s11  ;;  %p3108_p6 = scmp.lt.s32.totalorder %s3099_s11, %s3099_s11 }
  0x2c   : > { %p3102_p2 = pnand %p3100_p13, %p3064_p1  ;;  %p3109_p7 = por %p3108_p6, %p3107_p5 }
  0x2d   : > { %2834 = dma.hbm_to_vmem [thread:$0]  (!%p3373_p0), %s4200_s1, 1024, %s206_s23, [#allocation6], %s3241_s13, %s3241_s13, %s3242_s14  }
  0x2e   : > { %p3103_p4 = pneg %p3102_p2 }
  0x30   : > { %p3110_p9 = pnand %p3109_p7, %p3103_p4 }
  0x32   : > { %3113 = shalt.err (!%p3110_p9)
}
  0x33   : > { %s4201_s2 = sld [smem:[#allocation46_spill]] }
  0x35   : > { %246 = sbr.rel (%p3358_p10) target bundleno = 731 (0x2db), region = 44 }
  0x39   : > { %2837 = dma.hbm_to_vmem [thread:$0]  (!%p3373_p0), %s4201_s2, 9216, %s219_s12, [#allocation9], %s3241_s13, %s3241_s13, %s3242_s14  }
  0x3a   : > { %3195 = dma.done.wait (%p3362_p12), [#allocation6], 1024  }
  0x3b   : > { %3197 = vsyncadd (%p3362_p12), [#allocation6], 4294966272 }
  0x3c   : > { %3199 = dma.done.wait (%p3362_p12), [#allocation9], 9216  }
  0x3d   : > { %3201 = vsyncadd (%p3362_p12), [#allocation9], 4294958080  ;;  %s272_s30 = sand.u32 1, %s3214_s25   ;;  %s2461_s19 = sshll.u32 %s3222_s27, 7 }
  0x3e   : > { %s2365_s12 = sshll.u32 %s272_s30, 7  ;;  %s279_s23 = smul.u32 288, %s3226_s28 }
  0x3f   : > { %s3244_s13 = smov [#allocation2]   ;;  %s3116_s29 = scalar_lea.hbm %s4176_s0, 9216 }
  0x40   : > { %s280_s10 = sadd.s32 %s2461_s19, %s279_s23  ;;  %s290_s14 = sshll.u32 %s3244_s13, 4  ;;  %s291_s14 = int_to_ptr.vmem [resolvable:$true] %s290_s14 }
  0x41   : > { %s2368_s17 = sshll.u32 %s280_s10, 4 }
  0x42   : > { %s282_s20 = scalar_lea.hbm %s4176_s0, %s2368_s17 }
  0x43   : > { %s3114_s9 = scalar_lea.hbm %s282_s20, 2560  ;;  %p3117_p12 = scmp.lt.s32.totalorder %s282_s20, %s4176_s0 }
  0x44   : > { %p3115_p10 = scmp.ne.s32.totalorder %s282_s20, %s3114_s9  ;;  %p3118_p0 = scmp.lt.s32.totalorder %s3116_s29, %s3114_s9 }
  0x46   : > { %p3119_p1 = por %p3118_p0, %p3117_p12 }
  0x48   : > { %p3120_p11 = pnand %p3119_p1, %p3115_p10 }
  0x4a   : > { %3123 = shalt.err (!%p3120_p11)  }
  0x4b   : > { %s3124_s19 = scalar_lea.vmem %s291_s14, 2560  ;;  %p3129_p2 = scmp.lt.s32.totalorder %s291_s14, %s291_s14 }
  0x4c   : > { %p3125_p13 = scmp.ne.s32.totalorder %s291_s14, %s3124_s19  ;;  %p3130_p4 = scmp.lt.s32.totalorder %s3124_s19, %s3124_s19 }
  0x4e   : > { %p3131_p5 = por %p3130_p4, %p3129_p2 }
  0x50   : > { %p3132_p6 = pnand %p3131_p5, %p3125_p13 }
  0x52   : > { %3135 = shalt.err (!%p3132_p6)  }
  0x53   : > { %293 = dma.hbm_to_vmem [thread:$0]  %s282_s20, 2560, %s291_s14, [#allocation4] }
  0x54   : > { %s3420_s23 = scalar_lea.vmem [#allocation10], %s2365_s12 }
  0x55   : > { %3202 = dma.done.wait [#allocation4], 2560 }
  0x56   : > { %3203 = vsyncadd [#allocation4], 4294964736  ;;  %v2919_v0 = vld [vmem:[#allocation5 + $0x38] sm:$0xff]   ;;  %v2920_v1 = vld [vmem:[#allocation5 + $0x30] sm:$0xff]   ;;  %v3245_v54 = vmov 0.0   ;;  %s4202_s29 = sshll.u32 %s3222_s27, 3 }
  0x57   : > { %2753 = vmatprep.subr.bf16.mxu0 %v2919_v0  ;;  %v2921_v2 = vld [vmem:[#allocation5 + $0x28] sm:$0xff]   ;;  %v2922_v3 = vld [vmem:[#allocation5 + $0x20] sm:$0xff]   ;;  %v298_v4 = vld [vmem:[#allocation2] sm:$0xff]  ;;  %742 = vst [vmem:[#allocation3 + $0x18] sm:$0xff] %v3245_v54  ;;  %s2462_s17 = sshll.u32 %s3222_s27, 4  ;;  %s2456_s18 = sshll.u32 %s3226_s28, 5 }
  0x58   : > { %2754 = vmatpush3.bf16.msra.mxu0 %v2919_v0  ;;  %v299_v5 = vld [vmem:[#allocation2 + $0x8] sm:$0xff]  ;;  %v2924_v8 = vld [vmem:[#allocation5 + $0x10] sm:$0xff]   ;;  %v2925_v9 = vld [vmem:[#allocation5 + $0x8] sm:$0xff]   ;;  %743 = vst [vmem:[#allocation3 + $0x20] sm:$0xff] %v3245_v54  ;;  %s2257_s22 = sadd.s32 %s2462_s17, %s2456_s18  ;;  %s2260_s27 = sshll.u32 %s3420_s23, 4  ;;  %s4114_s27 = int_to_ptr.vmem [resolvable:$true] %s2260_s27 }
  0x59   : > { %2755 = vmatprep.subr.bf16.mxu0 %v2920_v1  ;;  %v318_v6 = vpack.c.bf16 %v299_v5, %v298_v4  ;;  %v2923_v7 = vld [vmem:[#allocation5 + $0x18] sm:$0xff]   ;;  %v2926_v10 = vld [vmem:[#allocation5] sm:$0xff]   ;;  %v301_v12 = vld [vmem:[#allocation2 + $0x18] sm:$0xff]  ;;  %739 = vst [vmem:[#allocation3] sm:$0xff] %v3245_v54  ;;  %s2457_s28 = sshll.u32 %s2257_s22, 7  ;;  %s4125_s1 = scalar_lea.sflag [#allocation7], %s272_s30 }
  0x5a   : > { %v300_v11 = vld [vmem:[#allocation2 + $0x10] sm:$0xff]  ;;  %v302_v13 = vld [vmem:[#allocation2 + $0x20] sm:$0xff]  ;;  %v303_v14 = vld [vmem:[#allocation2 + $0x28] sm:$0xff]  ;;  %740 = vst [vmem:[#allocation3 + $0x8] sm:$0xff] %v3245_v54  ;;  %s4120_s19 = scalar_lea.hbm %s4183_s7, %s2457_s28  ;;  %s3136_s2 = scalar_lea.vmem %s4114_s27, 2048 }
  0x5b   : > { %2769 = vmatprep.mubr.bf16.mxu0 %v318_v6  ;;  %v319_v15 = vpack.c.bf16 %v301_v12, %v300_v11  ;;  %v320_v16 = vpack.c.bf16 %v303_v14, %v302_v13  ;;  %v304_v17 = vld [vmem:[#allocation2 + $0x30] sm:$0xff]  ;;  %v305_v18 = vld [vmem:[#allocation2 + $0x38] sm:$0xff]  ;;  %v306_v19 = vld [vmem:[#allocation2 + $0x40] sm:$0xff]  ;;  %741 = vst [vmem:[#allocation3 + $0x10] sm:$0x3] %v3245_v54  ;;  %p3137_p7 = scmp.ne.s32.totalorder %s4114_s27, %s3136_s2 }
  0x5c   : > { %2756 = vmatpush3.bf16.msra.mxu0 %v2920_v1  ;;  %v307_v20 = vld [vmem:[#allocation2 + $0x48] sm:$0xff]  ;;  %v321_v21 = vpack.c.bf16 %v305_v18, %v304_v17  ;;  %v308_v23 = vld [vmem:[#allocation2 + $0x50] sm:$0xff]  ;;  %v309_v24 = vld [vmem:[#allocation2 + $0x58] sm:$0xff]  ;;  %744 = vst [vmem:[#allocation3 + $0x28] sm:$0x3] %v3245_v54 }
  0x5d   : > { %2757 = vmatprep.subr.bf16.mxu0 %v2921_v2  ;;  %v322_v22 = vpack.c.bf16 %v307_v20, %v306_v19  ;;  %v310_v25 = vld [vmem:[#allocation2 + $0x60] sm:$0xff]  ;;  %v311_v26 = vld [vmem:[#allocation2 + $0x68] sm:$0xff]  ;;  %v323_v27 = vpack.c.bf16 %v309_v24, %v308_v23  ;;  %v312_v29 = vld [vmem:[#allocation2 + $0x70] sm:$0xff]  ;;  %745 = vst [vmem:[#allocation3 + $0x30] sm:$0xff] %v3245_v54  ;;  %p3138_p9 = pnand %p3137_p7, %p3342_p3 }
  0x5e   : > { %v324_v28 = vpack.c.bf16 %v311_v26, %v310_v25  ;;  %v313_v30 = vld [vmem:[#allocation2 + $0x78] sm:$0xff]  ;;  %v314_v31 = vld [vmem:[#allocation2 + $0x80] sm:$0xff]  ;;  %v315_v32 = vld [vmem:[#allocation2 + $0x88] sm:$0xff]  ;;  %746 = vst [vmem:[#allocation3 + $0x38] sm:$0xff] %v3245_v54 }
  0x5f   : > { %v325_v33 = vpack.c.bf16 %v313_v30, %v312_v29  ;;  %v326_v34 = vpack.c.bf16 %v315_v32, %v314_v31  ;;  %v316_v35 = vld [vmem:[#allocation2 + $0x90] sm:$0xff]  ;;  %v317_v36 = vld [vmem:[#allocation2 + $0x98] sm:$0xff]  ;;  %v2927_v38 = vld [vmem:[#allocation8 + $0x78] sm:$0xff]   ;;  %747 = vst [vmem:[#allocation3 + $0x40] sm:$0x3] %v3245_v54  ;;  %p3139_p10 = pneg %p3138_p9 }
  0x60   : > { %2758 = vmatpush3.bf16.msra.mxu0 %v2921_v2  ;;  %v327_v37 = vpack.c.bf16 %v317_v36, %v316_v35  ;;  %v2928_v39 = vld [vmem:[#allocation8 + $0xf8] sm:$0xff]   ;;  %2481 = vmatprep.subr.bf16.mxu1 %v2927_v38  ;;  %v2931_v42 = vld [vmem:[#allocation8 + $0x70] sm:$0xff]   ;;  %v2935_v46 = vld [vmem:[#allocation8 + $0x68] sm:$0xff]   ;;  %748 = vst [vmem:[#allocation3 + $0x48] sm:$0xff] %v3245_v54 }
  0x61   : > { %2759 = vmatprep.subr.bf16.mxu0 %v2922_v3  ;;  %v2929_v40 = vld [vmem:[#allocation8 + $0x38] sm:$0xff]   ;;  %v2932_v43 = vld [vmem:[#allocation8 + $0xf0] sm:$0xff]   ;;  %v2936_v47 = vld [vmem:[#allocation8 + $0xe8] sm:$0xff]   ;;  %749 = vst [vmem:[#allocation3 + $0x50] sm:$0xff] %v3245_v54 }
  0x62   : > { %v2930_v41 = vld [vmem:[#allocation8 + $0xb8] sm:$0xff]   ;;  %2482 = vmatpush3.bf16.msra.mxu1 %v2929_v40  ;;  %v2933_v44 = vld [vmem:[#allocation8 + $0x30] sm:$0xff]   ;;  %v2937_v48 = vld [vmem:[#allocation8 + $0x28] sm:$0xff]   ;;  %750 = vst [vmem:[#allocation3 + $0x58] sm:$0x3] %v3245_v54 }
  0x63   : > { %v2934_v45 = vld [vmem:[#allocation8 + $0xb0] sm:$0xff]   ;;  %2483 = vmatprep.subr.bf16.mxu1 %v2931_v42  ;;  %v2938_v49 = vld [vmem:[#allocation8 + $0xa8] sm:$0xff]   ;;  %v2939_v50 = vld [vmem:[#allocation8 + $0x60] sm:$0xff]   ;;  %751 = vst [vmem:[#allocation3 + $0x60] sm:$0xff] %v3245_v54 }
  0x64   : > { %2760 = vmatpush3.bf16.msra.mxu0 %v2922_v3  ;;  %v2940_v51 = vld [vmem:[#allocation8 + $0xe0] sm:$0xff]   ;;  %752 = vst [vmem:[#allocation3 + $0x68] sm:$0xff] %v3245_v54  ;;  %753 = vst [vmem:[#allocation3 + $0x70] sm:$0x3] %v3245_v54  ;;  %v2943_v55 = vld [vmem:[#allocation8 + $0x58] sm:$0xff]  }
  0x65   : > { %2761 = vmatprep.subr.bf16.mxu0 %v2923_v7  ;;  %v2941_v52 = vld [vmem:[#allocation8 + $0x20] sm:$0xff]   ;;  %754 = vst [vmem:[#allocation3 + $0x78] sm:$0xff] %v3245_v54  ;;  %755 = vst [vmem:[#allocation3 + $0x80] sm:$0xff] %v3245_v54  ;;  %v2944_v56 = vld [vmem:[#allocation8 + $0xd8] sm:$0xff]  }
  0x66   : > { %2484 = vmatpush3.bf16.msra.mxu1 %v2933_v44  ;;  %v2942_v53 = vld [vmem:[#allocation8 + $0xa0] sm:$0xff]   ;;  %756 = vst [vmem:[#allocation3 + $0x88] sm:$0x3] %v3245_v54  ;;  %757 = vst [vmem:[#allocation3 + $0x90] sm:$0xff] %v3245_v54  ;;  %v2945_v57 = vld [vmem:[#allocation8 + $0x18] sm:$0xff]  }
  0x67   : > { %2485 = vmatprep.subr.bf16.mxu1 %v2935_v46  ;;  %758 = vst [vmem:[#allocation3 + $0x98] sm:$0xff] %v3245_v54  ;;  %759 = vst [vmem:[#allocation3 + $0xa0] sm:$0x3] %v3245_v54  ;;  %v2946_v58 = vld [vmem:[#allocation8 + $0x98] sm:$0xff]   ;;  %v2947_v59 = vld [vmem:[#allocation8 + $0x50] sm:$0xff]  }
  0x68   : > { %2762 = vmatpush3.bf16.msra.mxu0 %v2923_v7  ;;  %760 = vst [vmem:[#allocation3 + $0xa8] sm:$0xff] %v3245_v54  ;;  %761 = vst [vmem:[#allocation3 + $0xb0] sm:$0xff] %v3245_v54  ;;  %v2948_v60 = vld [vmem:[#allocation8 + $0xd0] sm:$0xff]   ;;  %v2951_v63 = vld [vmem:[#allocation8 + $0x48] sm:$0xff]  }
  0x69   : > { %2763 = vmatprep.subr.bf16.mxu0 %v2924_v8  ;;  %762 = vst [vmem:[#allocation3 + $0xb8] sm:$0x3] %v3245_v54  ;;  %763 = vst [vmem:[#allocation3 + $0xc0] sm:$0xff] %v3245_v54  ;;  %v2949_v61 = vld [vmem:[#allocation8 + $0x10] sm:$0xff]   ;;  %v2952_v0 = vld [vmem:[#allocation8 + $0xc8] sm:$0xff]  }
  0x6a   : > { %2486 = vmatpush3.bf16.msra.mxu1 %v2937_v48  ;;  %764 = vst [vmem:[#allocation3 + $0xc8] sm:$0xff] %v3245_v54  ;;  %765 = vst [vmem:[#allocation3 + $0xd0] sm:$0x3] %v3245_v54  ;;  %v2950_v62 = vld [vmem:[#allocation8 + $0x90] sm:$0xff]   ;;  %v2953_v1 = vld [vmem:[#allocation8 + $0x8] sm:$0xff]  }
  0x6b   : > { %2487 = vmatprep.subr.bf16.mxu1 %v2939_v50  ;;  %766 = vst [vmem:[#allocation3 + $0xd8] sm:$0xff] %v3245_v54  ;;  %767 = vst [vmem:[#allocation3 + $0xe0] sm:$0xff] %v3245_v54  ;;  %v2954_v2 = vld [vmem:[#allocation8 + $0x88] sm:$0xff]   ;;  %v2955_v3 = vld [vmem:[#allocation8 + $0x40] sm:$0xff]  }
  0x6c   : > { %2764 = vmatpush3.bf16.msra.mxu0 %v2924_v8  ;;  %768 = vst [vmem:[#allocation3 + $0xe8] sm:$0x3] %v3245_v54  ;;  %v2956_v4 = vld [vmem:[#allocation8 + $0xc0] sm:$0xff]   ;;  %v2959_v7 = vld [vmem:[#allocation8 + $0x178] sm:$0xff]   ;;  %v3434_v12 = vld [vmem:[%s4180_s4] ss:$0 sm:$0xff] }
  0x6d   : > { %2765 = vmatprep.subr.bf16.mxu0 %v2925_v9  ;;  %v2957_v5 = vld [vmem:[#allocation8] sm:$0xff]   ;;  %v2967_v8 = vld [vmem:[#allocation8 + $0x1f8] sm:$0xff]  }
  0x6e   : > { %2488 = vmatpush3.bf16.msra.mxu1 %v2941_v52  ;;  %v2958_v6 = vld [vmem:[#allocation8 + $0x80] sm:$0xff]  }
  0x6f   : > { %2489 = vmatprep.subr.bf16.mxu1 %v2943_v55 }
  0x70   : > { %2766 = vmatpush3.bf16.msra.mxu0 %v2925_v9  ;;  %v3425_v9 = vld [vmem:[%s4179_s3] ss:$0 sm:$0xff] }
  0x71   : > { %2767 = vmatprep.subr.bf16.mxu0 %v2926_v10 }
  0x72   : > { %2490 = vmatpush3.bf16.msra.mxu1 %v2945_v57 }
  0x73   : > { %2491 = vmatprep.subr.bf16.mxu1 %v2947_v59 }
  0x74   : > { %2768 = vmatpush3.bf16.msra.mxu0 %v2926_v10  ;;  %v3429_v10 = vstv %s4202_s29  ;;  %s3247_s29 = smov [#allocation10]  }
  0x75   : > { %2545 = vmatprep.subr.bf16.mxu0 %v2928_v39  ;;  %v660_v14 = vadd.s32 1, %v3429_v10  ;;  %v3443_v23 = vadd.s32 3, %v3429_v10  ;;  %vm669_vm2 = vcmp.ge.s32.totalorder %v3429_v10, 1  ;;  %vm679_vm3 = vcmp.le.s32.totalorder %v3429_v10, 16  ;;  %s3140_s21 = sshll.u32 %s3247_s29, 4  ;;  %s3141_s21 = int_to_ptr.vmem [resolvable:$false] %s3140_s21 }
  0x76   : > { %2492 = vmatpush3.bf16.msra.mxu1 %v2949_v61  ;;  %v3450_v29 = vadd.s32 2, %v3429_v10  ;;  %v3457_v36 = vadd.s32 5, %v3429_v10  ;;  %v3473_v46 = vadd.s32 7, %v3429_v10  ;;  %vm3481_vm9 = vmand %vm669_vm2, %vm679_vm3  ;;  %s3142_s11 = scalar_lea.vmem %s3141_s21, 4096  ;;  %p3143_p12 = scmp.lt.s32.totalorder %s4114_s27, %s3141_s21 }
  0x77   : > { %2770 = vmatmul.mubr.bf16.vlgmr.msra.gmra.mxu0 %v319_v15  ;;  %2493 = vmatprep.subr.bf16.mxu1 %v2951_v63  ;;  %vm670_vm0 = vcmp.ge.s32.totalorder %v660_v14, 1  ;;  %vm680_vm1 = vcmp.le.s32.totalorder %v660_v14, 16  ;;  %vm672_vm4 = vcmp.ge.s32.totalorder %v3443_v23, 1  ;;  %vm682_vm5 = vcmp.le.s32.totalorder %v3443_v23, 16  ;;  %v2997_v23 = vld [vmem:[#allocation8 + $0x208] sm:$0xff]   ;;  %p3144_p0 = scmp.lt.s32.totalorder %s3142_s11, %s3136_s2 }
  0x78   : > { %2773 = vmatprep.mubr.bf16.mxu0 %v320_v16  ;;  %2546 = vmatpush3.bf16.msra.mxu0 %v2930_v41  ;;  %vm3461_vm6 = vmand %vm670_vm0, %vm680_vm1  ;;  %vm671_vm7 = vcmp.ge.s32.totalorder %v3450_v29, 1  ;;  %vm681_vm8 = vcmp.le.s32.totalorder %v3450_v29, 16  ;;  %vm674_vm10 = vcmp.ge.s32.totalorder %v3457_v36, 1  ;;  %vm684_vm11 = vcmp.le.s32.totalorder %v3457_v36, 16 }
  0x79   : > { %2547 = vmatprep.subr.bf16.mxu0 %v2932_v43  ;;  %vm3519_vm14 = vmand %vm672_vm4, %vm682_vm5  ;;  %vm676_vm2 = vcmp.ge.s32.totalorder %v3473_v46, 1  ;;  %vm686_vm3 = vcmp.le.s32.totalorder %v3473_v46, 16  ;;  %v3570_v36 = vadd.s32 9, %v3429_v10  ;;  %v2964_v46 = vld [vmem:[#allocation8 + $0x128] sm:$0xff]   ;;  %p3145_p1 = por %p3144_p0, %p3143_p12 }
  0x7a   : > { %2494 = vmatpush3.bf16.msra.mxu1 %v2953_v1  ;;  %vm3531_vm15 = vmand %vm671_vm7, %vm681_vm8 }
  0x7b   : > { %2495 = vmatprep.subr.bf16.mxu1 %v2955_v3  ;;  %vm3557_vm0 = vmand %vm674_vm10, %vm684_vm11  ;;  %p3146_p11 = pnand %p3145_p1, %p3139_p10 }
  0x7c   : > { %2548 = vmatpush3.bf16.msra.mxu0 %v2934_v45  ;;  %v3470_v45 = vadd.s32 4, %v3429_v10  ;;  %vm2999_vm1 = vmpackc.low %vm3481_vm9, %vm3481_vm9 }
  0x7d   : > { %2549 = vmatprep.subr.bf16.mxu0 %v2936_v47  ;;  %vm3002_vm7 = vmpackc.low %vm3461_vm6, %vm3461_vm6 }
  0x7e   : > { %2496 = vmatpush3.bf16.msra.mxu1 %v2957_v5  ;;  %vm673_vm12 = vcmp.ge.s32.totalorder %v3470_v45, 1  ;;  %vm683_vm13 = vcmp.le.s32.totalorder %v3470_v45, 16  ;;  %vm3637_vm10 = vmand %vm676_vm2, %vm686_vm3 }
  0x7f   : > { %2774 = vmatmul.mubr.bf16.gmra.mxu0 %v321_v21  ;;  %2609 = vmatprep.subr.bf16.mxu1 %v2959_v7  ;;  %vm3581_vm4 = vmand %vm673_vm12, %vm683_vm13 }
  0x80   : > { %2777 = vmatprep.mubr.bf16.mxu0 %v322_v22  ;;  %2550 = vmatpush3.bf16.msra.mxu0 %v2938_v49  ;;  %vm3005_vm13 = vmpackc.low %vm3531_vm15, %vm3531_vm15 }
  0x81   : > { %2551 = vmatprep.subr.bf16.mxu0 %v2940_v51 }
  0x84   : > { %2552 = vmatpush3.bf16.msra.mxu0 %v2942_v53 }
  0x85   : > { %2553 = vmatprep.subr.bf16.mxu0 %v2944_v56  ;;  %v3488_v56 = vadd.s32 6, %v3429_v10 }
  0x87   : > { %2778 = vmatmul.mubr.bf16.gmra.mxu0 %v323_v27  ;;  %vm675_vm5 = vcmp.ge.s32.totalorder %v3488_v56, 1  ;;  %vm685_vm8 = vcmp.le.s32.totalorder %v3488_v56, 16 }
  0x88   : > { %2781 = vmatprep.mubr.bf16.mxu0 %v324_v28  ;;  %2554 = vmatpush3.bf16.msra.mxu0 %v2946_v58  ;;  %vm3652_vm12 = vmand %vm675_vm5, %vm685_vm8 }
  0x89   : > { %2555 = vmatprep.subr.bf16.mxu0 %v2948_v60  ;;  %vm3008_vm5 = vmpackc.low %vm3519_vm14, %vm3519_vm14 }
  0x8a   : > { %vm3824_vm8 = vmpackc.low %vm3637_vm10, %vm3637_vm10 }
  0x8c   : > { %2556 = vmatpush3.bf16.msra.mxu0 %v2950_v62 }
  0x8d   : > { %2557 = vmatprep.subr.bf16.mxu0 %v2952_v0 }
  0x8f   : > { %2782 = vmatmul.mubr.bf16.gmra.mxu0 %v325_v33 }
  0x90   : > { %2785 = vmatprep.mubr.bf16.mxu0 %v326_v34  ;;  %2558 = vmatpush3.bf16.msra.mxu0 %v2954_v2 }
  0x91   : > { %2559 = vmatprep.subr.bf16.mxu0 %v2956_v4 }
  0x94   : > { %2560 = vmatpush3.bf16.msra.mxu0 %v2958_v6 }
  0x95   : > { %2673 = vmatprep.subr.bf16.mxu0 %v2967_v8 }
  0x97   : > { %2786 = vmatmul.mubr.bf16.gmra.mxu0 %v327_v37 }
 0x137   : > { %v2771_v11 = vpop.f32.mrf.mxu0 }
 0x138   : > { %v514_v13 = vmul.f32 %v2771_v11, %v3425_v9 }
 0x139   : > { %v426_v15 = vpop.f32.mrf.mxu0 }
 0x13a   : > { %v541_v16 = vadd.f32 %v3434_v12, %v514_v13  ;;  %v512_v17 = vmul.f32 %v3425_v9, %v426_v15 }
 0x13b   : > { %v2772_v18 = vpop.f32.mrf.mxu0 }
 0x13c   : > { %v561_v19 = vadd.f32 3.0, %v541_v16  ;;  %v539_v20 = vadd.f32 %v3434_v12, %v512_v17  ;;  %v515_v21 = vmul.f32 %v2772_v18, %v3425_v9 }
 0x13d   : > { %v429_v22 = vpop.f32.mrf.mxu0 }
 0x13e   : > { %v581_v24 = vmax.f32 %v561_v19, 0.0  ;;  %v559_v25 = vadd.f32 3.0, %v539_v20  ;;  %v542_v26 = vadd.f32 %v3434_v12, %v515_v21  ;;  %v513_v27 = vmul.f32 %v3425_v9, %v429_v22 }
 0x13f   : > { %v2775_v28 = vpop.f32.mrf.mxu0 }
 0x140   : > { %v601_v30 = vmin.f32 %v581_v24, 6.0  ;;  %v579_v31 = vmax.f32 %v559_v25, 0.0  ;;  %v562_v32 = vadd.f32 3.0, %v542_v26  ;;  %v540_v33 = vadd.f32 %v3434_v12, %v513_v27  ;;  %v2979_v25 = vld [vmem:[#allocation8 + $0x148] sm:$0xff]  }
 0x141   : > { %v518_v34 = vmul.f32 %v2775_v28, %v3425_v9  ;;  %v442_v35 = vpop.f32.mrf.mxu0 }
 0x142   : > { %v621_v37 = vmul.f32 %v601_v30, %v541_v16  ;;  %v599_v38 = vmin.f32 %v579_v31, 6.0  ;;  %v582_v39 = vmax.f32 %v562_v32, 0.0  ;;  %v560_v40 = vadd.f32 3.0, %v540_v33 }
 0x143   : > { %v545_v42 = vadd.f32 %v3434_v12, %v518_v34  ;;  %v516_v43 = vmul.f32 %v3425_v9, %v442_v35  ;;  %v2776_v44 = vpop.f32.mrf.mxu0 }
 0x144   : > { %v3475_v47 = vmul.f32 0.16666667, %v621_v37  ;;  %v619_v48 = vmul.f32 %v599_v38, %v539_v20  ;;  %v602_v49 = vmin.f32 %v582_v39, 6.0  ;;  %v580_v50 = vmax.f32 %v560_v40, 0.0 }
 0x145   : > { %v565_v52 = vadd.f32 3.0, %v545_v42  ;;  %v543_v53 = vadd.f32 %v3434_v12, %v516_v43  ;;  %v519_v54 = vmul.f32 %v2776_v44, %v3425_v9  ;;  %v445_v55 = vpop.f32.mrf.mxu0 }
 0x146   : > { %v721_v57 = vsel %vm3461_vm6, %v3475_v47, 0.0  ;;  %v3493_v58 = vmul.f32 0.16666667, %v619_v48  ;;  %v622_v59 = vmul.f32 %v602_v49, %v542_v26  ;;  %v600_v60 = vmin.f32 %v580_v50, 6.0 }
 0x147   : > { %771 = vst [vmem:[#allocation3 + $0x19] sm:$0xff] %v721_v57  ;;  %v585_v61 = vmax.f32 %v565_v52, 0.0  ;;  %v563_v62 = vadd.f32 3.0, %v543_v53  ;;  %v546_v63 = vadd.f32 %v3434_v12, %v519_v54  ;;  %v517_v0 = vmul.f32 %v3425_v9, %v445_v55  ;;  %v2779_v1 = vpop.f32.mrf.mxu0 }
 0x148   : > { %v719_v2 = vsel %vm3481_vm9, %v3493_v58, 0.0  ;;  %v3500_v3 = vmul.f32 0.16666667, %v622_v59  ;;  %v620_v4 = vmul.f32 %v600_v60, %v540_v33  ;;  %v522_v5 = vmul.f32 %v2779_v1, %v3425_v9 }
 0x149   : > { %769 = vst [vmem:[#allocation3 + $0x1] sm:$0xff] %v719_v2  ;;  %v605_v6 = vmin.f32 %v585_v61, 6.0  ;;  %v583_v7 = vmax.f32 %v563_v62, 0.0  ;;  %v566_v8 = vadd.f32 3.0, %v546_v63  ;;  %v544_v11 = vadd.f32 %v3434_v12, %v517_v0  ;;  %v458_v13 = vpop.f32.mrf.mxu0 }
 0x14a   : > { %v722_v14 = vsel %vm3461_vm6, %v3500_v3, 0.0  ;;  %v640_v15 = vmul.f32 0.16666667, %v620_v4  ;;  %v549_v16 = vadd.f32 %v3434_v12, %v522_v5  ;;  %v520_v17 = vmul.f32 %v3425_v9, %v458_v13 }
 0x14b   : > { %772 = vst [vmem:[#allocation3 + $0x21] sm:$0xff] %v722_v14  ;;  %v625_v18 = vmul.f32 %v605_v6, %v545_v42  ;;  %v603_v19 = vmin.f32 %v583_v7, 6.0  ;;  %v586_v20 = vmax.f32 %v566_v8, 0.0  ;;  %v564_v21 = vadd.f32 3.0, %v544_v11  ;;  %v2780_v22 = vpop.f32.mrf.mxu0  ;;  %v2968_v8 = vld [vmem:[#allocation8 + $0x1b8] sm:$0xff]  }
 0x14c   : > { %v720_v24 = vsel %vm3481_vm9, %v640_v15, 0.0  ;;  %v569_v26 = vadd.f32 3.0, %v549_v16  ;;  %v547_v27 = vadd.f32 %v3434_v12, %v520_v17  ;;  %v523_v28 = vmul.f32 %v2780_v22, %v3425_v9 }
 0x14d   : > { %770 = vst [vmem:[#allocation3 + $0x9] sm:$0xff] %v720_v24  ;;  %v3525_v30 = vmul.f32 0.16666667, %v625_v18  ;;  %v623_v31 = vmul.f32 %v603_v19, %v543_v53  ;;  %v606_v32 = vmin.f32 %v586_v20, 6.0  ;;  %v584_v33 = vmax.f32 %v564_v21, 0.0  ;;  %v461_v34 = vpop.f32.mrf.mxu0  ;;  %v2971_v24 = vld [vmem:[#allocation8 + $0x1f0] sm:$0xff]  }
 0x14e   : > { %v589_v35 = vmax.f32 %v569_v26, 0.0  ;;  %v567_v37 = vadd.f32 3.0, %v547_v27  ;;  %v550_v38 = vadd.f32 %v3434_v12, %v523_v28  ;;  %v521_v39 = vmul.f32 %v3425_v9, %v461_v34 }
 0x14f   : > { %v725_v40 = vsel %vm3519_vm14, %v3525_v30, 0.0  ;;  %v3540_v42 = vmul.f32 0.16666667, %v623_v31  ;;  %v626_v43 = vmul.f32 %v606_v32, %v546_v63  ;;  %v604_v44 = vmin.f32 %v584_v33, 6.0  ;;  %v2783_v48 = vpop.f32.mrf.mxu0  ;;  %v862_v63 = vld [vmem:[#allocation3 + $0x18] sm:$0xff]  ;;  %v2960_v32 = vld [vmem:[#allocation8 + $0x138] sm:$0xff]  }
 0x150   : > { %775 = vst [vmem:[#allocation3 + $0x49] sm:$0xff] %v725_v40  ;;  %v609_v29 = vmin.f32 %v589_v35, 6.0  ;;  %v587_v49 = vmax.f32 %v567_v37, 0.0  ;;  %v570_v50 = vadd.f32 3.0, %v550_v38  ;;  %v548_v52 = vadd.f32 %v3434_v12, %v521_v39  ;;  %v789_v31 = vld [vmem:[#allocation3] sm:$0xff] }
 0x151   : > { %v723_v53 = vsel %vm3531_vm15, %v3540_v42, 0.0  ;;  %v3546_v54 = vmul.f32 0.16666667, %v626_v43  ;;  %v624_v55 = vmul.f32 %v604_v44, %v544_v11  ;;  %v474_v57 = vpop.f32.mrf.mxu0  ;;  %v3000_v6 = vpack.c.bf16 %v640_v15, %v3493_v58  ;;  %v2961_v39 = vld [vmem:[#allocation8 + $0x170] sm:$0xff]   ;;  %v2986_v15 = vld [vmem:[#allocation8 + $0x100] sm:$0xff]  }
 0x152   : > { %773 = vst [vmem:[#allocation3 + $0x31] sm:$0xff] %v723_v53  ;;  %v629_v59 = vmul.f32 %v609_v29, %v549_v16  ;;  %v607_v60 = vmin.f32 %v587_v49, 6.0  ;;  %v590_v61 = vmax.f32 %v570_v50, 0.0  ;;  %v568_v62 = vadd.f32 3.0, %v548_v52  ;;  %v863_v0 = vld [vmem:[#allocation3 + $0x20] sm:$0xff] }
 0x153   : > { %v726_v1 = vsel %vm3519_vm14, %v3546_v54, 0.0  ;;  %v3551_v2 = vmul.f32 0.16666667, %v624_v55  ;;  %v3561_v5 = vpack.c.bf16 %v863_v0, %v862_v63  ;;  %3001 = vmatprep.mubr.msk.bf16.mxu1 %vm2999_vm1, %v3000_v6  ;;  %v2784_v7 = vpop.f32.mrf.mxu0  ;;  %v526_v20 = vmul.f32 %v2783_v48, %v3425_v9  ;;  %v2972_v48 = vld [vmem:[#allocation8 + $0x1b0] sm:$0xff]   ;;  %vm3762_vm14 = vmpackc.low %vm3581_vm4, %vm3581_vm4 }
 0x154   : > { %776 = vst [vmem:[#allocation3 + $0x51] sm:$0xff] %v726_v1  ;;  %v3572_v11 = vmul.f32 0.16666667, %v629_v59  ;;  %v627_v13 = vmul.f32 %v607_v60, %v547_v27  ;;  %v610_v14 = vmin.f32 %v590_v61, 6.0  ;;  %v588_v51 = vmax.f32 %v568_v62, 0.0  ;;  %v837_v16 = vld [vmem:[#allocation3 + $0x2] sm:$0xff] }
 0x155   : > { %v838_v17 = vld [vmem:[#allocation3 + $0xa] sm:$0xff]  ;;  %v724_v58 = vsel %vm3531_vm15, %v3551_v2, 0.0  ;;  %1712 = vmatprep.mubr.bf16.mxu0 %v3561_v5  ;;  %v524_v21 = vmul.f32 %v3425_v9, %v474_v57  ;;  %v477_v22 = vpop.f32.mrf.mxu0  ;;  %v553_v34 = vadd.f32 %v3434_v12, %v526_v20  ;;  %v527_v37 = vmul.f32 %v2784_v7, %v3425_v9  ;;  %v839_v53 = vld [vmem:[#allocation3 + $0x1a] sm:$0xff]  ;;  %v840_v55 = vld [vmem:[#allocation3 + $0x22] sm:$0xff] }
 0x156   : > { %v853_v18 = vpack.c.bf16 %v838_v17, %v837_v16  ;;  %v790_v19 = vld [vmem:[#allocation3 + $0x8] sm:$0xff]  ;;  %774 = vst [vmem:[#allocation3 + $0x39] sm:$0xff] %v724_v58  ;;  %v729_v45 = vsel %vm3557_vm0, %v3572_v11, 0.0  ;;  %v3592_v26 = vmul.f32 0.16666667, %v627_v13  ;;  %v630_v27 = vmul.f32 %v610_v14, %v550_v38  ;;  %v2975_v60 = vld [vmem:[#allocation8 + $0x1e8] sm:$0xff]  }
 0x157   : > { %v608_v28 = vmin.f32 %v588_v51, 6.0  ;;  %779 = vst [vmem:[#allocation3 + $0x79] sm:$0xff] %v729_v45  ;;  %v805_v33 = vpack.c.bf16 %v790_v19, %v789_v31  ;;  %v551_v35 = vadd.f32 %v3434_v12, %v524_v21  ;;  %v2787_v40 = vpop.f32.mrf.mxu0  ;;  %v573_v29 = vadd.f32 3.0, %v553_v34  ;;  %v2962_v63 = vld [vmem:[#allocation8 + $0x130] sm:$0xff]   ;;  %v2976_v51 = vld [vmem:[#allocation8 + $0x1a8] sm:$0xff]  }
 0x158   : > { %1713 = vmatmul.mubr.bf16.vlgmr.msra.gmra.mxu0 %v853_v18  ;;  %v727_v43 = vsel %vm3581_vm4, %v3592_v26, 0.0  ;;  %v3600_v44 = vmul.f32 0.16666667, %v630_v27  ;;  %v3603_v50 = vadd.f32 %v3434_v12, %v527_v37  ;;  %v525_v57 = vmul.f32 %v3425_v9, %v477_v22  ;;  %v887_v21 = vld [vmem:[#allocation3 + $0x21] sm:$0xff] }
 0x159   : > { %v628_v38 = vmul.f32 %v608_v28, %v548_v52  ;;  %2674 = vmatpush3.bf16.msra.mxu0 %v2968_v8  ;;  %777 = vst [vmem:[#allocation3 + $0x61] sm:$0xff] %v727_v43  ;;  %1616 = vmatmul.mubr.bf16.vlgmr.msra.gmra.mxu1 %v805_v33  ;;  %v571_v49 = vadd.f32 3.0, %v551_v35  ;;  %v490_v59 = vpop.f32.mrf.mxu0  ;;  %v3003_v62 = vpack.c.bf16 %v3500_v3, %v3475_v47  ;;  %v3618_v0 = vadd.s32 8, %v3429_v10  ;;  %v2963_v8 = vld [vmem:[#allocation8 + $0x168] sm:$0xff]   ;;  %v864_v3 = vld [vmem:[#allocation3 + $0x30] sm:$0xff]  ;;  %v866_v33 = vld [vmem:[#allocation3 + $0x48] sm:$0xff] }
 0x15a   : > { %2675 = vmatprep.subr.bf16.mxu0 %v2971_v24  ;;  %v730_v52 = vsel %vm3557_vm0, %v3600_v44, 0.0  ;;  %2610 = vmatpush3.bf16.msra.mxu1 %v2960_v32  ;;  %v593_v1 = vmax.f32 %v573_v29, 0.0  ;;  %v574_v7 = vadd.f32 3.0, %v3603_v50  ;;  %v3622_v41 = vadd.f32 %v3434_v12, %v525_v57  ;;  %v2978_v29 = vld [vmem:[#allocation8 + $0x1a0] sm:$0xff]   ;;  %v2981_v57 = vld [vmem:[#allocation8 + $0x1d8] sm:$0xff]  }
 0x15b   : > { %v3609_v61 = vmul.f32 0.16666667, %v628_v38  ;;  %3004 = vmatprep.mubr.msk.bf16.mxu1 %vm3002_vm7, %v3003_v62  ;;  %780 = vst [vmem:[#allocation3 + $0x81] sm:$0xff] %v730_v52  ;;  %v591_v6 = vmax.f32 %v571_v49, 0.0  ;;  %2611 = vmatprep.subr.bf16.mxu1 %v2961_v39  ;;  %v2788_v13 = vpop.f32.mrf.mxu0  ;;  %v3627_v14 = vpack.c.bf16 %v840_v55, %v839_v53  ;;  %v530_v10 = vmul.f32 %v2787_v40, %v3425_v9  ;;  %v867_v20 = vld [vmem:[#allocation3 + $0x50] sm:$0xff]  ;;  %vm3803_vm7 = vmpackc.low %vm3652_vm12, %vm3652_vm12 }
 0x15c   : > { %vm678_vm6 = vcmp.ge.s32.totalorder %v3570_v36, 1  ;;  %vm688_vm9 = vcmp.le.s32.totalorder %v3570_v36, 16  ;;  %v613_v16 = vmin.f32 %v593_v1, 6.0  ;;  %v594_v58 = vmax.f32 %v574_v7, 0.0  ;;  %v2977_v39 = vld [vmem:[#allocation8 + $0x1e0] sm:$0xff]  }
 0x15d   : > { %v728_v47 = vsel %vm3581_vm4, %v3609_v61, 0.0  ;;  %2676 = vmatpush3.bf16.msra.mxu0 %v2972_v48  ;;  %v611_v17 = vmin.f32 %v591_v6, 6.0  ;;  %v865_v18 = vld [vmem:[#allocation3 + $0x38] sm:$0xff]  ;;  %v572_v19 = vadd.f32 3.0, %v3622_v41  ;;  %v3644_v24 = vadd.f32 %v3434_v12, %v530_v10  ;;  %v493_v37 = vpop.f32.mrf.mxu0  ;;  %vm3713_vm2 = vmand %vm678_vm6, %vm688_vm9 }
 0x15e   : > { %778 = vst [vmem:[#allocation3 + $0x69] sm:$0xff] %v728_v47  ;;  %2677 = vmatprep.subr.bf16.mxu0 %v2975_v60  ;;  %v3641_v22 = vpack.c.bf16 %v865_v18, %v864_v3  ;;  %2612 = vmatpush3.bf16.msra.mxu1 %v2962_v63  ;;  %v528_v45 = vmul.f32 %v3425_v9, %v490_v59  ;;  %vm677_vm11 = vcmp.ge.s32.totalorder %v3618_v0, 1  ;;  %v614_v31 = vmin.f32 %v594_v58, 6.0  ;;  %v2969_v63 = vld [vmem:[#allocation8 + $0x158] sm:$0xff]   ;;  %v842_v47 = vld [vmem:[#allocation3 + $0x3a] sm:$0xff]  ;;  %vm3014_vm4 = vmpackc.low %vm3557_vm0, %vm3557_vm0 }
 0x15f   : > { %v633_v27 = vmul.f32 %v613_v16, %v553_v34  ;;  %v631_v28 = vmul.f32 %v611_v17, %v551_v35  ;;  %v592_v32 = vmax.f32 %v572_v19, 0.0  ;;  %2613 = vmatprep.subr.bf16.mxu1 %v2963_v8  ;;  %v3657_v43 = vpack.c.bf16 %v867_v20, %v866_v33  ;;  %v2965_v35 = vld [vmem:[#allocation8 + $0x160] sm:$0xff]  }
 0x160   : > { %1720 = vmatprep.mubr.bf16.mxu0 %v3641_v22  ;;  %v577_v34 = vadd.f32 3.0, %v3644_v24  ;;  %v555_v38 = vadd.f32 %v3434_v12, %v528_v45  ;;  %v531_v48 = vmul.f32 %v2788_v13, %v3425_v9  ;;  %v634_v53 = vmul.f32 %v614_v31, %v3603_v50  ;;  %v2966_v50 = vld [vmem:[#allocation8 + $0x120] sm:$0xff]   ;;  %v868_v8 = vld [vmem:[#allocation3 + $0x60] sm:$0xff]  ;;  %v2982_v13 = vld [vmem:[#allocation8 + $0x198] sm:$0xff]  }
 0x161   : > { %2678 = vmatpush3.bf16.msra.mxu0 %v2976_v51  ;;  %v3662_v49 = vmul.f32 0.16666667, %v633_v27  ;;  %v3664_v56 = vmul.f32 0.16666667, %v631_v28  ;;  %1624 = vmatmul.mubr.bf16.gmra.mxu1 %v3561_v5  ;;  %v612_v55 = vmin.f32 %v592_v32, 6.0  ;;  %v3674_v59 = vpack.c.bf16 %v3551_v2, %v3540_v42  ;;  %v2970_v32 = vld [vmem:[#allocation8 + $0x118] sm:$0xff]  }
 0x162   : > { %1721 = vmatmul.mubr.bf16.gmra.mxu0 %v3627_v14  ;;  %v597_v5 = vmax.f32 %v577_v34, 0.0  ;;  %v575_v60 = vadd.f32 3.0, %v555_v38  ;;  %v558_v52 = vadd.f32 %v3434_v12, %v531_v48  ;;  %v529_v62 = vmul.f32 %v3425_v9, %v493_v37  ;;  %2614 = vmatpush3.bf16.msra.mxu1 %v2964_v46  ;;  %v841_v9 = vld [vmem:[#allocation3 + $0x32] sm:$0xff]  ;;  %v2984_v34 = vld [vmem:[#allocation8 + $0x190] sm:$0xff]  }
 0x163   : > { %3007 = vmatprep.mubr.msk.bf16.mxu1 %vm3005_vm13, %v3674_v59  ;;  %1728 = vmatprep.mubr.bf16.mxu0 %v3657_v43  ;;  %v733_v42 = vsel %vm3637_vm10, %v3662_v49, 0.0  ;;  %v731_v1 = vsel %vm3652_vm12, %v3664_v56, 0.0  ;;  %v3691_v6 = vmul.f32 0.16666667, %v634_v53  ;;  %v632_v7 = vmul.f32 %v612_v55, %v3622_v41  ;;  %v2987_v48 = vld [vmem:[#allocation8 + $0x1c8] sm:$0xff]  }
 0x164   : > { %2679 = vmatprep.subr.bf16.mxu0 %v2977_v39  ;;  %783 = vst [vmem:[#allocation3 + $0xa9] sm:$0xff] %v733_v42  ;;  %781 = vst [vmem:[#allocation3 + $0x91] sm:$0xff] %v731_v1  ;;  %v617_v10 = vmin.f32 %v597_v5, 6.0  ;;  %2615 = vmatprep.subr.bf16.mxu1 %v2965_v35  ;;  %v595_v51 = vmax.f32 %v575_v60, 0.0  ;;  %v578_v16 = vadd.f32 3.0, %v558_v52  ;;  %vm687_vm1 = vcmp.le.s32.totalorder %v3618_v0, 16 }
 0x165   : > { %v869_v3 = vld [vmem:[#allocation3 + $0x68] sm:$0xff]  ;;  %2680 = vmatpush3.bf16.msra.mxu0 %v2978_v29  ;;  %v734_v17 = vsel %vm3637_vm10, %v3691_v6, 0.0  ;;  %v3697_v58 = vmul.f32 0.16666667, %v632_v7  ;;  %v556_v41 = vadd.f32 %v3434_v12, %v529_v62  ;;  %v3707_v28 = vpack.c.bf16 %v842_v47, %v841_v9  ;;  %v2973_v39 = vld [vmem:[#allocation8 + $0x150] sm:$0xff]   ;;  %vm3725_vm3 = vmand %vm677_vm11, %vm687_vm1 }
 0x166   : > { %2681 = vmatprep.subr.bf16.mxu0 %v2981_v57  ;;  %784 = vst [vmem:[#allocation3 + $0xb1] sm:$0xff] %v734_v17  ;;  %v3701_v18 = vpack.c.bf16 %v869_v3, %v868_v8  ;;  %v637_v19 = vmul.f32 %v617_v10, %v3644_v24  ;;  %v615_v20 = vmin.f32 %v595_v51, 6.0  ;;  %v598_v45 = vmax.f32 %v578_v16, 0.0  ;;  %2616 = vmatpush3.bf16.msra.mxu1 %v2966_v50  ;;  %v2983_v24 = vld [vmem:[#allocation8 + $0x1d0] sm:$0xff]   ;;  %v843_v5 = vld [vmem:[#allocation3 + $0x4a] sm:$0xff]  ;;  %v844_v50 = vld [vmem:[#allocation3 + $0x52] sm:$0xff] }
 0x167   : > { %v732_v27 = vsel %vm3652_vm12, %v3697_v58, 0.0  ;;  %v576_v31 = vadd.f32 3.0, %v556_v41  ;;  %2617 = vmatprep.subr.bf16.mxu1 %v2969_v63  ;;  %v2974_v57 = vld [vmem:[#allocation8 + $0x110] sm:$0xff]   ;;  %v2988_v60 = vld [vmem:[#allocation8 + $0x188] sm:$0xff]   ;;  %v3748_v1 = vpack.c.bf16 %v844_v50, %v843_v5  ;;  %v2985_v47 = vld [vmem:[#allocation8 + $0x140] sm:$0xff]   ;;  %v3768_v16 = vpack.c.bf16 %v3609_v61, %v3592_v26 }
 0x168   : > { %782 = vst [vmem:[#allocation3 + $0x99] sm:$0xff] %v732_v27  ;;  %v3717_v33 = vmul.f32 0.16666667, %v637_v19  ;;  %v635_v46 = vmul.f32 %v615_v20, %v555_v38  ;;  %v618_v37 = vmin.f32 %v598_v45, 6.0  ;;  %v3009_v38 = vpack.c.bf16 %v3546_v54, %v3525_v30  ;;  %v870_v62 = vld [vmem:[#allocation3 + $0x78] sm:$0xff]  ;;  %v2990_v3 = vld [vmem:[#allocation8 + $0x180] sm:$0xff]   ;;  %vm3056_vm10 = vmpackc.low %vm3713_vm2, %vm3713_vm2 }
 0x169   : > { %2682 = vmatpush3.bf16.msra.mxu0 %v2982_v13  ;;  %1632 = vmatmul.mubr.bf16.gmra.mxu1 %v3641_v22  ;;  %v596_v35 = vmax.f32 %v576_v31, 0.0  ;;  %v2980_v8 = vld [vmem:[#allocation8 + $0x108] sm:$0xff]   ;;  %v2989_v13 = vld [vmem:[#allocation8 + $0x1c0] sm:$0xff]   ;;  %v845_v19 = vld [vmem:[#allocation3 + $0x62] sm:$0xff]  ;;  %v3785_v61 = vpack.c.bf16 %v3600_v44, %v3572_v11  ;;  %vm3246_vm6 = vmmov 1  }
 0x16a   : > { %1729 = vmatmul.mubr.bf16.gmra.mxu0 %v3707_v28  ;;  %3010 = vmatprep.mubr.msk.bf16.mxu1 %vm3008_vm5, %v3009_v38  ;;  %v737_v0 = vsel %vm3713_vm2, %v3717_v33, 0.0  ;;  %v3738_v29 = vmul.f32 0.16666667, %v635_v46  ;;  %v638_v53 = vmul.f32 %v618_v37, %v558_v52  ;;  %v871_v52 = vld [vmem:[#allocation3 + $0x80] sm:$0xff]  ;;  %v846_v20 = vld [vmem:[#allocation3 + $0x6a] sm:$0xff]  ;;  %vm3026_vm9 = vmpackc.low %vm3531_vm15, %vm3246_vm6 }
 0x16b   : > { %1736 = vmatprep.mubr.bf16.mxu0 %v3701_v18  ;;  %787 = vst [vmem:[#allocation3 + $0xd9] sm:$0xff] %v737_v0  ;;  %v616_v55 = vmin.f32 %v596_v35, 6.0  ;;  %2618 = vmatpush3.bf16.msra.mxu1 %v2970_v32  ;;  %v3752_v9 = vpack.c.bf16 %v871_v52, %v870_v62  ;;  %v872_v17 = vld [vmem:[#allocation3 + $0x90] sm:$0xff]  ;;  %v2991_v45 = vld [vmem:[#allocation8 + $0x238] sm:$0xff]   ;;  %v3776_v26 = vpack.c.bf16 %v846_v20, %v845_v19  ;;  %v847_v31 = vld [vmem:[#allocation3 + $0x7a] sm:$0xff] }
 0x16c   : > { %2683 = vmatprep.subr.bf16.mxu0 %v2983_v24  ;;  %v735_v30 = vsel %vm3725_vm3, %v3738_v29, 0.0  ;;  %v3743_v54 = vmul.f32 0.16666667, %v638_v53  ;;  %2619 = vmatprep.subr.bf16.mxu1 %v2973_v39  ;;  %v848_v32 = vld [vmem:[#allocation3 + $0x82] sm:$0xff]  ;;  %v888_v62 = vld [vmem:[#allocation3 + $0x31] sm:$0xff]  ;;  %vm3041_vm15 = vmpackc.low %vm3557_vm0, %vm3246_vm6 }
 0x16d   : > { %2684 = vmatpush3.bf16.msra.mxu0 %v2984_v34  ;;  %785 = vst [vmem:[#allocation3 + $0xc1] sm:$0xff] %v735_v30  ;;  %v636_v63 = vmul.f32 %v616_v55, %v556_v41  ;;  %v874_v24 = vld [vmem:[#allocation3 + $0xa8] sm:$0xff]  ;;  %v875_v46 = vld [vmem:[#allocation3 + $0xb0] sm:$0xff]  ;;  %v3794_v37 = vpack.c.bf16 %v848_v32, %v847_v31  ;;  %v3809_v34 = vpack.c.bf16 %v3697_v58, %v3664_v56  ;;  %v2992_v50 = vld [vmem:[#allocation8 + $0x230] sm:$0xff]  }
 0x16e   : > { %2685 = vmatprep.subr.bf16.mxu0 %v2987_v48  ;;  %v738_v42 = vsel %vm3713_vm2, %v3743_v54, 0.0  ;;  %v3796_v39 = vpack.c.bf16 %v875_v46, %v874_v24  ;;  %v3830_v58 = vpack.c.bf16 %v3691_v6, %v3662_v49  ;;  %v851_v55 = vld [vmem:[#allocation3 + $0xaa] sm:$0xff]  ;;  %v886_v49 = vld [vmem:[#allocation3 + $0x19] sm:$0xff]  ;;  %v3027_v52 = vpack.c.bf16 %v3551_v2, %v888_v62  ;;  %vm3050_vm0 = vmpackc.low %vm3725_vm3, %vm3725_vm3 }
 0x16f   : > { %788 = vst [vmem:[#allocation3 + $0xe1] sm:$0xff] %v738_v42  ;;  %v3750_v7 = vmul.f32 0.16666667, %v636_v63  ;;  %2620 = vmatpush3.bf16.msra.mxu1 %v2974_v57  ;;  %v873_v41 = vld [vmem:[#allocation3 + $0x98] sm:$0xff]  ;;  %v902_v5 = vpack.c.bf16 %v887_v21, %v886_v49  ;;  %v961_v30 = vld [vmem:[#allocation3 + $0x49] sm:$0xff]  ;;  %v2996_v63 = vld [vmem:[#allocation8 + $0x210] sm:$0xff]   ;;  %v3057_v36 = vpack.c.bf16 %v3743_v54, %v3717_v33 }
 0x170   : > { %2621 = vmatprep.subr.bf16.mxu1 %v2979_v25  ;;  %v3774_v27 = vpack.c.bf16 %v873_v41, %v872_v17  ;;  %v849_v38 = vld [vmem:[#allocation3 + $0x92] sm:$0xff]  ;;  %v850_v0 = vld [vmem:[#allocation3 + $0x9a] sm:$0xff] }
 0x171   : > { %2686 = vmatpush3.bf16.msra.mxu0 %v2988_v60  ;;  %1640 = vmatmul.mubr.bf16.gmra.mxu1 %v3657_v43  ;;  %v736_v10 = vsel %vm3725_vm3, %v3750_v7, 0.0  ;;  %v3817_v53 = vpack.c.bf16 %v850_v0, %v849_v38  ;;  %v852_v57 = vld [vmem:[#allocation3 + $0xb2] sm:$0xff]  ;;  %v3051_v4 = vpack.c.bf16 %v3750_v7, %v3738_v29 }
 0x172   : > { %1737 = vmatmul.mubr.bf16.gmra.mxu0 %v3748_v1  ;;  %3013 = vmatprep.mubr.msk.bf16.mxu1 %vm3762_vm14, %v3768_v16  ;;  %786 = vst [vmem:[#allocation3 + $0xc9] sm:$0xff] %v736_v10  ;;  %v3836_v25 = vpack.c.bf16 %v852_v57, %v851_v55  ;;  %v962_v6 = vld [vmem:[#allocation3 + $0x51] sm:$0xff] }
 0x173   : > { %1744 = vmatprep.mubr.bf16.mxu0 %v3752_v9  ;;  %2622 = vmatpush3.bf16.msra.mxu1 %v2980_v8  ;;  %v976_v60 = vpack.c.bf16 %v962_v6, %v961_v30  ;;  %v2998_v2 = vld [vmem:[#allocation8 + $0x200] sm:$0xff]   ;;  %v949_v29 = vld [vmem:[#allocation3 + $0xd8] sm:$0xff] }
 0x174   : > { %2687 = vmatprep.subr.bf16.mxu0 %v2989_v13  ;;  %2623 = vmatprep.subr.bf16.mxu1 %v2985_v47  ;;  %v876_v35 = vld [vmem:[#allocation3 + $0xc0] sm:$0xff] }
 0x175   : > { %2688 = vmatpush3.bf16.msra.mxu0 %v2990_v3 }
 0x176   : > { %v950_v7 = vld [vmem:[#allocation3 + $0xe0] sm:$0xff] }
 0x177   : > { %2624 = vmatpush3.bf16.msra.mxu1 %v2986_v15  ;;  %v958_v13 = vpack.c.bf16 %v950_v7, %v949_v29  ;;  %v997_v12 = vld [vmem:[#allocation3 + $0xda] sm:$0xff]  ;;  %v998_v33 = vld [vmem:[#allocation3 + $0xe2] sm:$0xff] }
 0x178   : > { %2789 = vmatprep.subr.bf16.mxu1 %v2991_v45  ;;  %v1006_v54 = vpack.c.bf16 %v998_v33, %v997_v12 }
 0x179   : > { %1648 = vmatmul.mubr.bf16.gmra.mxu1 %v3701_v18  ;;  %v877_v48 = vld [vmem:[#allocation3 + $0xc8] sm:$0xff] }
 0x17a   : > { %1745 = vmatmul.mubr.bf16.gmra.mxu0 %v3776_v26  ;;  %3016 = vmatprep.mubr.msk.bf16.mxu1 %vm3014_vm4, %v3785_v61  ;;  %v3815_v40 = vpack.c.bf16 %v877_v48, %v876_v35  ;;  %v925_v42 = vld [vmem:[#allocation3 + $0xca] sm:$0xff] }
 0x17b   : > { %1752 = vmatprep.mubr.bf16.mxu0 %v3774_v27 }
 0x181   : > { %1656 = vmatmul.mubr.bf16.gmra.mxu1 %v3752_v9 }
 0x182   : > { %1753 = vmatmul.mubr.bf16.gmra.mxu0 %v3794_v37  ;;  %3019 = vmatprep.mubr.msk.bf16.mxu1 %vm3803_vm7, %v3809_v34 }
 0x183   : > { %1760 = vmatprep.mubr.bf16.mxu0 %v3796_v39 }
 0x189   : > { %1664 = vmatmul.mubr.bf16.gmra.mxu1 %v3774_v27 }
 0x18a   : > { %1761 = vmatmul.mubr.bf16.gmra.mxu0 %v3817_v53  ;;  %3022 = vmatprep.mubr.msk.bf16.mxu1 %vm3824_vm8, %v3830_v58 }
 0x18b   : > { %1768 = vmatprep.mubr.bf16.mxu0 %v3815_v40 }
 0x191   : > { %1672 = vmatmul.mubr.bf16.gmra.mxu1 %v3796_v39 }
 0x192   : > { %1769 = vmatmul.mubr.bf16.gmra.mxu0 %v3836_v25  ;;  %1809 = vmatprep.mubr.bf16.mxu1 %v3627_v14  ;;  %v2993_v14 = vld [vmem:[#allocation8 + $0x228] sm:$0xff]  }
 0x193   : > { %3025 = vmatprep.mubr.msk.bf16.mxu0 %vm3005_vm13, %v3674_v59  ;;  %v2994_v59 = vld [vmem:[#allocation8 + $0x220] sm:$0xff]  }
 0x199   : > { %1810 = vmatmul.mubr.bf16.vlgmr.msra.gmra.mxu1 %v902_v5 }
 0x19a   : > { %1907 = vmatmul.mubr.bf16.vlgmr.msra.gmra.mxu0 %v3641_v22  ;;  %2790 = vmatpush3.bf16.msra.mxu1 %v2991_v45  ;;  %v2995_v22 = vld [vmem:[#allocation8 + $0x218] sm:$0xff]  }
 0x19b   : > { %1817 = vmatprep.mubr.bf16.mxu1 %v3707_v28  ;;  %1914 = vmatprep.mubr.bf16.mxu0 %v976_v60 }
 0x19c   : > { %2791 = vmatprep.subr.bf16.mxu1 %v2992_v50 }
 0x19e   : > { %2792 = vmatpush3.bf16.msra.mxu1 %v2992_v50 }
 0x19f   : > { %2793 = vmatprep.subr.bf16.mxu1 %v2993_v14 }
 0x1a1   : > { %3028 = vmatmul.mubr.msk.bf16.gmra.mxu1 %vm3026_vm9, %v3027_v52 }
 0x1a2   : > { %1915 = vmatmul.mubr.bf16.gmra.mxu0 %v3657_v43  ;;  %1825 = vmatprep.mubr.bf16.mxu1 %v3748_v1  ;;  %v894_v43 = vld [vmem:[#allocation3 + $0x79] sm:$0xff] }
 0x1a3   : > { %3031 = vmatprep.mubr.msk.bf16.mxu0 %vm3762_vm14, %v3768_v16  ;;  %2794 = vmatpush3.bf16.msra.mxu1 %v2993_v14 }
 0x1a4   : > { %2795 = vmatprep.subr.bf16.mxu1 %v2994_v59 }
 0x1a7   : > { %2796 = vmatpush3.bf16.msra.mxu1 %v2994_v59 }
 0x1a8   : > { %2797 = vmatprep.subr.bf16.mxu1 %v2995_v22 }
 0x1a9   : > { %1826 = vmatmul.mubr.bf16.gmra.mxu1 %v976_v60 }
 0x1aa   : > { %1923 = vmatmul.mubr.bf16.gmra.mxu0 %v3701_v18  ;;  %1833 = vmatprep.mubr.bf16.mxu1 %v3776_v26  ;;  %v3042_v18 = vpack.c.bf16 %v3600_v44, %v894_v43  ;;  %v924_v44 = vld [vmem:[#allocation3 + $0xc2] sm:$0xff] }
 0x1ab   : > { %3034 = vmatprep.mubr.msk.bf16.mxu0 %vm3014_vm4, %v3785_v61  ;;  %2798 = vmatpush3.bf16.msra.mxu1 %v2995_v22  ;;  %v933_v8 = vpack.c.bf16 %v925_v42, %v924_v44 }
 0x1ac   : > { %2799 = vmatprep.subr.bf16.mxu1 %v2996_v63 }
 0x1af   : > { %2800 = vmatpush3.bf16.msra.mxu1 %v2996_v63 }
 0x1b0   : > { %2801 = vmatprep.subr.bf16.mxu1 %v2997_v23 }
 0x1b1   : > { %3037 = vmatmul.mubr.msk.bf16.gmra.mxu1 %vm3762_vm14, %v3768_v16 }
 0x1b2   : > { %1931 = vmatmul.mubr.bf16.gmra.mxu0 %v3752_v9  ;;  %1841 = vmatprep.mubr.bf16.mxu1 %v3794_v37 }
 0x1b3   : > { %3040 = vmatprep.mubr.msk.bf16.mxu0 %vm3803_vm7, %v3809_v34  ;;  %2802 = vmatpush3.bf16.msra.mxu1 %v2997_v23 }
 0x1b4   : > { %2803 = vmatprep.subr.bf16.mxu1 %v2998_v2 }
 0x1b7   : > { %2804 = vmatpush3.bf16.msra.mxu1 %v2998_v2 }
 0x1b9   : > { %3043 = vmatmul.mubr.msk.bf16.gmra.mxu1 %vm3041_vm15, %v3042_v18 }
 0x1ba   : > { %1939 = vmatmul.mubr.bf16.gmra.mxu0 %v3774_v27  ;;  %1849 = vmatprep.mubr.bf16.mxu1 %v3817_v53 }
 0x1bb   : > { %3046 = vmatprep.mubr.msk.bf16.mxu0 %vm3824_vm8, %v3830_v58 }
 0x1c1   : > { %3049 = vmatmul.mubr.msk.bf16.gmra.mxu1 %vm3803_vm7, %v3809_v34 }
 0x1c2   : > { %1947 = vmatmul.mubr.bf16.gmra.mxu0 %v3796_v39  ;;  %1857 = vmatprep.mubr.bf16.mxu1 %v3836_v25 }
 0x1c3   : > { %3052 = vmatprep.mubr.msk.bf16.mxu0 %vm3050_vm0, %v3051_v4 }
 0x1c9   : > { %3055 = vmatmul.mubr.msk.bf16.gmra.mxu1 %vm3824_vm8, %v3830_v58 }
 0x1ca   : > { %1955 = vmatmul.mubr.bf16.gmra.mxu0 %v3815_v40  ;;  %1865 = vmatprep.mubr.bf16.mxu1 %v933_v8 }
 0x1cb   : > { %3058 = vmatprep.mubr.msk.bf16.mxu0 %vm3056_vm10, %v3057_v36 }
 0x1d1   : > { %3061 = vmatmul.mubr.msk.bf16.gmra.mxu1 %vm3050_vm0, %v3051_v4 }
 0x1d2   : > { %1963 = vmatmul.mubr.bf16.gmra.mxu0 %v958_v13  ;;  %2805 = vmatprep.mubr.bf16.mxu1 %v3707_v28 }
 0x1d9   : > { %2806 = vmatmul.mubr.bf16.vlgmr.msra.gmra.mxu1 %v3748_v1 }
 0x1da   : > { %2809 = vmatprep.mubr.bf16.mxu1 %v3776_v26 }
 0x1e1   : > { %2810 = vmatmul.mubr.bf16.gmra.mxu1 %v3794_v37 }
 0x1e2   : > { %2813 = vmatprep.mubr.bf16.mxu1 %v3817_v53 }
 0x1e9   : > { %2814 = vmatmul.mubr.bf16.gmra.mxu1 %v3836_v25 }
 0x1ea   : > { %2817 = vmatprep.mubr.bf16.mxu1 %v933_v8 }
 0x1f1   : > { %2818 = vmatmul.mubr.bf16.gmra.mxu1 %v1006_v54 }
 0x218   : > { %v2561_v9 = vpop.f32.mrf.mxu0 }
 0x219   : > { %v2497_v47 = vpop.f32.mrf.mxu1 }
 0x21a   : > { %v2562_v3 = vpop.f32.mrf.mxu0 }
 0x21b   : > { %v2563_v10 = vadd.f32 %v2562_v3, %v2561_v9  ;;  %v2498_v28 = vpop.f32.mrf.mxu1 }
 0x21c   : > { %v2564_v51 = vpop.f32.mrf.mxu0  ;;  %v2499_v1 = vadd.f32 %v2498_v28, %v2497_v47 }
 0x21d   : > { %v2500_v16 = vpop.f32.mrf.mxu1 }
 0x21e   : > { %v2565_v17 = vpop.f32.mrf.mxu0  ;;  %v3908_v41 = vadd.f32 %v2563_v10, %v2499_v1 }
 0x21f   : > { %v2566_v15 = vadd.f32 %v2565_v17, %v2564_v51  ;;  %v2501_v19 = vpop.f32.mrf.mxu1 }
 0x220   : > { %v2502_v20 = vadd.f32 %v2501_v19, %v2500_v16 }
 0x221   : > { %v2503_v45 = vpop.f32.mrf.mxu1 }
 0x222   : > { %v2567_v27 = vpop.f32.mrf.mxu0  ;;  %v3910_v26 = vadd.f32 %v2566_v15, %v2502_v20 }
 0x223   : > { %v2504_v61 = vpop.f32.mrf.mxu1 }
 0x224   : > { %v2568_v31 = vpop.f32.mrf.mxu0  ;;  %v2505_v32 = vadd.f32 %v2504_v61, %v2503_v45 }
 0x225   : > { %v2569_v24 = vadd.f32 %v2568_v31, %v2567_v27  ;;  %v2506_v46 = vpop.f32.mrf.mxu1 }
 0x226   : > { %v2570_v37 = vpop.f32.mrf.mxu0 }
 0x227   : > { %v3912_v39 = vadd.f32 %v2569_v24, %v2505_v32  ;;  %v2507_v11 = vpop.f32.mrf.mxu1 }
 0x228   : > { %v2571_v34 = vpop.f32.mrf.mxu0  ;;  %v2508_v35 = vadd.f32 %v2507_v11, %v2506_v46 }
 0x229   : > { %v2572_v48 = vadd.f32 %v2571_v34, %v2570_v37  ;;  %v2509_v38 = vpop.f32.mrf.mxu1 }
 0x22a   : > { %v2573_v0 = vpop.f32.mrf.mxu0 }
 0x22b   : > { %v3914_v40 = vadd.f32 %v2572_v48, %v2508_v35  ;;  %v2510_v53 = vpop.f32.mrf.mxu1 }
 0x22c   : > { %v2574_v56 = vpop.f32.mrf.mxu0  ;;  %v2511_v58 = vadd.f32 %v2510_v53, %v2509_v38 }
 0x22d   : > { %v2575_v55 = vadd.f32 %v2574_v56, %v2573_v0  ;;  %v2512_v57 = vpop.f32.mrf.mxu1 }
 0x22e   : > { %v2576_v25 = vpop.f32.mrf.mxu0 }
 0x22f   : > { %v3916_v21 = vadd.f32 %v2575_v55, %v2511_v58  ;;  %v2513_v49 = vpop.f32.mrf.mxu1 }
 0x230   : > { %v2577_v6 = vpop.f32.mrf.mxu0  ;;  %v2514_v5 = vadd.f32 %v2513_v49, %v2512_v57 }
 0x231   : > { %v2578_v50 = vadd.f32 %v2577_v6, %v2576_v25  ;;  %v2515_v30 = vpop.f32.mrf.mxu1 }
 0x232   : > { %v2579_v60 = vpop.f32.mrf.mxu0 }
 0x233   : > { %v3918_v14 = vadd.f32 %v2578_v50, %v2514_v5  ;;  %v2516_v62 = vpop.f32.mrf.mxu1 }
 0x234   : > { %v2580_v59 = vpop.f32.mrf.mxu0  ;;  %v2517_v52 = vadd.f32 %v2516_v62, %v2515_v30 }
 0x235   : > { %v2581_v22 = vadd.f32 %v2580_v59, %v2579_v60  ;;  %v2518_v63 = vpop.f32.mrf.mxu1 }
 0x236   : > { %v2582_v23 = vpop.f32.mrf.mxu0 }
 0x237   : > { %v3920_v2 = vadd.f32 %v2581_v22, %v2517_v52  ;;  %v2519_v43 = vpop.f32.mrf.mxu1 }
 0x238   : > { %v2583_v18 = vpop.f32.mrf.mxu0  ;;  %v2520_v4 = vadd.f32 %v2519_v43, %v2518_v63 }
 0x239   : > { %4229 = vst [vmem:[#allocation24_spill] sm:$0xff] %v3920_v2  ;;  %v2584_v44 = vadd.f32 %v2583_v18, %v2582_v23  ;;  %v2521_v42 = vpop.f32.mrf.mxu1 }
 0x23a   : > { %v2585_v8 = vpop.f32.mrf.mxu0 }
 0x23b   : > { %v3922_v36 = vadd.f32 %v2584_v44, %v2520_v4  ;;  %v2522_v29 = vpop.f32.mrf.mxu1 }
 0x23c   : > { %v2586_v7 = vpop.f32.mrf.mxu0  ;;  %v2523_v13 = vadd.f32 %v2522_v29, %v2521_v42 }
 0x23d   : > { %4230 = vst [vmem:[#allocation25_spill] sm:$0xff] %v3922_v36  ;;  %v2587_v12 = vadd.f32 %v2586_v7, %v2585_v8  ;;  %v2524_v33 = vpop.f32.mrf.mxu1 }
 0x23e   : > { %v2588_v54 = vpop.f32.mrf.mxu0 }
 0x23f   : > { %v3924_v9 = vadd.f32 %v2587_v12, %v2523_v13  ;;  %v2525_v47 = vpop.f32.mrf.mxu1 }
 0x240   : > { %v2589_v3 = vpop.f32.mrf.mxu0  ;;  %v2526_v10 = vadd.f32 %v2525_v47, %v2524_v33 }
 0x241   : > { %4231 = vst [vmem:[#allocation26_spill] sm:$0xff] %v3924_v9  ;;  %v2590_v28 = vadd.f32 %v2589_v3, %v2588_v54  ;;  %v2527_v51 = vpop.f32.mrf.mxu1 }
 0x242   : > { %v2591_v1 = vpop.f32.mrf.mxu0 }
 0x243   : > { %v3926_v16 = vadd.f32 %v2590_v28, %v2526_v10  ;;  %v2528_v17 = vpop.f32.mrf.mxu1 }
 0x244   : > { %v2592_v15 = vpop.f32.mrf.mxu0  ;;  %v2529_v19 = vadd.f32 %v2528_v17, %v2527_v51 }
 0x245   : > { %4232 = vst [vmem:[#allocation27_spill] sm:$0xff] %v3926_v16  ;;  %v2593_v20 = vadd.f32 %v2592_v15, %v2591_v1  ;;  %v2530_v45 = vpop.f32.mrf.mxu1 }
 0x246   : > { %v2594_v27 = vpop.f32.mrf.mxu0 }
 0x247   : > { %v3928_v61 = vadd.f32 %v2593_v20, %v2529_v19  ;;  %v2531_v31 = vpop.f32.mrf.mxu1 }
 0x248   : > { %v2595_v32 = vpop.f32.mrf.mxu0  ;;  %v2532_v24 = vadd.f32 %v2531_v31, %v2530_v45 }
 0x249   : > { %4233 = vst [vmem:[#allocation28_spill] sm:$0xff] %v3928_v61  ;;  %v2596_v46 = vadd.f32 %v2595_v32, %v2594_v27  ;;  %v2533_v37 = vpop.f32.mrf.mxu1 }
 0x24a   : > { %v2597_v11 = vpop.f32.mrf.mxu0 }
 0x24b   : > { %v3930_v34 = vadd.f32 %v2596_v46, %v2532_v24  ;;  %v2534_v35 = vpop.f32.mrf.mxu1 }
 0x24c   : > { %v2598_v48 = vpop.f32.mrf.mxu0  ;;  %v2535_v38 = vadd.f32 %v2534_v35, %v2533_v37 }
 0x24d   : > { %4234 = vst [vmem:[#allocation29_spill] sm:$0xff] %v3930_v34  ;;  %v2599_v0 = vadd.f32 %v2598_v48, %v2597_v11  ;;  %v2536_v53 = vpop.f32.mrf.mxu1 }
 0x24e   : > { %v2600_v56 = vpop.f32.mrf.mxu0 }
 0x24f   : > { %v3932_v58 = vadd.f32 %v2599_v0, %v2535_v38  ;;  %v2537_v55 = vpop.f32.mrf.mxu1 }
 0x250   : > { %v2601_v57 = vpop.f32.mrf.mxu0  ;;  %v2538_v25 = vadd.f32 %v2537_v55, %v2536_v53 }
 0x251   : > { %4235 = vst [vmem:[#allocation30_spill] sm:$0xff] %v3932_v58  ;;  %v2602_v49 = vadd.f32 %v2601_v57, %v2600_v56  ;;  %v2539_v6 = vpop.f32.mrf.mxu1 }
 0x252   : > { %v3934_v5 = vpop.f32.mrf.mxu0 }
 0x253   : > { %v3936_v50 = vadd.f32 %v2602_v49, %v2538_v25  ;;  %v2540_v30 = vpop.f32.mrf.mxu1 }
 0x254   : > { %v3938_v60 = vpop.f32.mrf.mxu0  ;;  %v3940_v62 = vadd.f32 %v2540_v30, %v2539_v6 }
 0x255   : > { %4236 = vst [vmem:[#allocation31_spill] sm:$0xff] %v3936_v50  ;;  %v2542_v59 = vpop.f32.mrf.mxu1 }
 0x256   : > { %v3942_v52 = vpop.f32.mrf.mxu0 }
 0x257   : > { %v2543_v22 = vpop.f32.mrf.mxu1 }
 0x258   : > { %v2607_v63 = vpop.f32.mrf.mxu0  ;;  %v3944_v23 = vadd.f32 %v2543_v22, %v2542_v59 }
 0x259   : > { %v2625_v43 = vpop.f32.mrf.mxu1  ;;  %v2608_v2 = vadd.f32 %v2607_v63, %v3942_v52 }
 0x25a   : > { %v2689_v18 = vpop.f32.mrf.mxu0 }
 0x25b   : > { %v2626_v4 = vpop.f32.mrf.mxu1  ;;  %v3993_v52 = vadd.f32 %v2608_v2, %v3944_v23 }
 0x25c   : > { %v2690_v44 = vpop.f32.mrf.mxu0 }
 0x25d   : > { %v2628_v42 = vpop.f32.mrf.mxu1 }
 0x25e   : > { %v2692_v8 = vpop.f32.mrf.mxu0 }
 0x25f   : > { %v2629_v29 = vpop.f32.mrf.mxu1 }
 0x260   : > { %v2693_v7 = vpop.f32.mrf.mxu0 }
 0x261   : > { %v2631_v13 = vpop.f32.mrf.mxu1 }
 0x262   : > { %v2695_v12 = vpop.f32.mrf.mxu0 }
 0x263   : > { %v2632_v33 = vpop.f32.mrf.mxu1 }
 0x264   : > { %v2696_v54 = vpop.f32.mrf.mxu0 }
 0x265   : > { %v2634_v47 = vpop.f32.mrf.mxu1 }
 0x266   : > { %v2698_v3 = vpop.f32.mrf.mxu0 }
 0x267   : > { %v2635_v10 = vpop.f32.mrf.mxu1 }
 0x268   : > { %v2699_v28 = vpop.f32.mrf.mxu0 }
 0x269   : > { %v2637_v51 = vpop.f32.mrf.mxu1 }
 0x26a   : > { %v3946_v1 = vpop.f32.mrf.mxu0 }
 0x26b   : > { %v2638_v17 = vpop.f32.mrf.mxu1 }
 0x26c   : > { %v3948_v15 = vpop.f32.mrf.mxu0 }
 0x26d   : > { %v2640_v19 = vpop.f32.mrf.mxu1 }
 0x26e   : > { %v3950_v20 = vpop.f32.mrf.mxu0 }
 0x26f   : > { %4237 = vst [vmem:[#allocation32_spill] sm:$0xff] %v3950_v20  ;;  %v2641_v45 = vpop.f32.mrf.mxu1  ;;  %v2691_v20 = vadd.f32 %v2690_v44, %v2689_v18 }
 0x270   : > { %v3952_v27 = vpop.f32.mrf.mxu0 }
 0x271   : > { %4238 = vst [vmem:[#allocation33_spill] sm:$0xff] %v3952_v27  ;;  %v2643_v31 = vpop.f32.mrf.mxu1 }
 0x272   : > { %v3954_v32 = vpop.f32.mrf.mxu0 }
 0x273   : > { %4239 = vst [vmem:[#allocation34_spill] sm:$0xff] %v3954_v32  ;;  %v2644_v24 = vpop.f32.mrf.mxu1 }
 0x274   : > { %v3956_v46 = vpop.f32.mrf.mxu0 }
 0x275   : > { %4240 = vst [vmem:[#allocation35_spill] sm:$0xff] %v3956_v46  ;;  %v2646_v37 = vpop.f32.mrf.mxu1  ;;  %v2636_v46 = vadd.f32 %v2635_v10, %v2634_v47  ;;  %v2700_v47 = vadd.f32 %v2699_v28, %v2698_v3  ;;  %v2642_v10 = vadd.f32 %v2641_v45, %v2640_v19  ;;  %v4252_v19 = vld [vmem:[#allocation24_spill] sm:$0xff] }
 0x276   : > { %v3958_v11 = vpop.f32.mrf.mxu0  ;;  %v4250_v2 = vld [vmem:[#allocation32_spill] sm:$0xff] }
 0x277   : > { %4241 = vst [vmem:[#allocation36_spill] sm:$0xff] %v3958_v11  ;;  %v2647_v35 = vpop.f32.mrf.mxu1 }
 0x278   : > { %v3960_v48 = vpop.f32.mrf.mxu0  ;;  %v2648_v63 = vadd.f32 %v2647_v35, %v2646_v37  ;;  %v4251_v23 = vld [vmem:[#allocation33_spill] sm:$0xff] }
 0x279   : > { %4242 = vst [vmem:[#allocation37_spill] sm:$0xff] %v3960_v48  ;;  %v2649_v38 = vpop.f32.mrf.mxu1  ;;  %v2627_v48 = vadd.f32 %v2626_v4, %v2625_v43  ;;  %v2694_v4 = vadd.f32 %v2693_v7, %v2692_v8  ;;  %v2706_v3 = vadd.f32 %v4251_v23, %v4250_v2 }
 0x27a   : > { %v3962_v0 = vpop.f32.mrf.mxu0 }
 0x27b   : > { %4243 = vst [vmem:[#allocation38_spill] sm:$0xff] %v3962_v0  ;;  %v2650_v53 = vpop.f32.mrf.mxu1 }
 0x27c   : > { %v3964_v56 = vpop.f32.mrf.mxu0  ;;  %v2651_v18 = vadd.f32 %v2650_v53, %v2649_v38  ;;  %v4261_v53 = vld [vmem:[#allocation27_spill] sm:$0xff] }
 0x27d   : > { %4244 = vst [vmem:[#allocation39_spill] sm:$0xff] %v3964_v56  ;;  %v2652_v55 = vpop.f32.mrf.mxu1 }
 0x27e   : > { %v3966_v57 = vpop.f32.mrf.mxu0  ;;  %v4256_v37 = vld [vmem:[#allocation36_spill] sm:$0xff] }
 0x27f   : > { %4245 = vst [vmem:[#allocation40_spill] sm:$0xff] %v3966_v57  ;;  %v2653_v25 = vpop.f32.mrf.mxu1  ;;  %v2630_v57 = vadd.f32 %v2629_v29, %v2628_v42 }
 0x280   : > { %v2717_v49 = vpop.f32.mrf.mxu0  ;;  %v2654_v44 = vadd.f32 %v2653_v25, %v2652_v55  ;;  %v4257_v35 = vld [vmem:[#allocation37_spill] sm:$0xff]  ;;  %v4017_v25 = vld [vmem:[%s4181_s5] ss:$0 sm:$0xff] }
 0x281   : > { %v2655_v6 = vpop.f32.mrf.mxu1  ;;  %v1815_v43 = vadd.f32 %v2630_v57, %v3910_v26 }
 0x282   : > { %v3968_v30 = vpop.f32.mrf.mxu0 }
 0x283   : > { %4246 = vst [vmem:[#allocation41_spill] sm:$0xff] %v3968_v30  ;;  %v2656_v59 = vpop.f32.mrf.mxu1  ;;  %v2633_v30 = vadd.f32 %v2632_v33, %v2631_v13  ;;  %v2639_v13 = vadd.f32 %v2638_v17, %v2637_v51  ;;  %v1823_v33 = vadd.f32 %v2636_v46, %v3914_v40  ;;  %v1912_v7 = vadd.f32 %v2694_v4, %v1815_v43  ;;  %v4255_v46 = vld [vmem:[#allocation25_spill] sm:$0xff] }
 0x284   : > { %v2720_v22 = vpop.f32.mrf.mxu0  ;;  %v4260_v38 = vld [vmem:[#allocation39_spill] sm:$0xff] }
 0x285   : > { %v2658_v50 = vpop.f32.mrf.mxu1  ;;  %v1820_v29 = vadd.f32 %v2633_v30, %v3912_v39  ;;  %v1828_v40 = vadd.f32 %v2639_v13, %v3916_v21  ;;  %v1920_v17 = vadd.f32 %v2700_v47, %v1823_v33  ;;  %v1839_v21 = vadd.f32 %v2648_v63, %v4255_v46  ;;  %v4265_v13 = vld [vmem:[#allocation29_spill] sm:$0xff] }
 0x286   : > { %v3970_v58 = vpop.f32.mrf.mxu0 }
 0x287   : > { %4247 = vst [vmem:[#allocation42_spill] sm:$0xff] %v3970_v58  ;;  %v2659_v34 = vpop.f32.mrf.mxu1  ;;  %v2605_v58 = vadd.f32 %v3938_v60, %v3934_v5 }
 0x288   : > { %v2723_v61 = vpop.f32.mrf.mxu0  ;;  %v2660_v28 = vadd.f32 %v2659_v34, %v2658_v50  ;;  %v1847_v34 = vadd.f32 %v2654_v44, %v4261_v53  ;;  %v4262_v50 = vld [vmem:[#allocation40_spill] sm:$0xff] }
 0x289   : > { %v2661_v16 = vpop.f32.mrf.mxu1  ;;  %v3990_v60 = vadd.f32 %v2605_v58, %v3940_v62  ;;  %v1831_v62 = vadd.f32 %v2642_v10, %v3918_v14  ;;  %v4259_v14 = vld [vmem:[#allocation38_spill] sm:$0xff]  ;;  %v2718_v55 = vadd.f32 %v2717_v49, %v4262_v50 }
 0x28a   : > { %v3972_v0 = vpop.f32.mrf.mxu0  ;;  %v1855_v33 = vadd.f32 %v2660_v28, %v4265_v13  ;;  %v4026_v49 = vld [vmem:[%s4182_s6] ss:$0 sm:$0xff] }
 0x28b   : > { %4248 = vst [vmem:[#allocation43_spill] sm:$0xff] %v3972_v0  ;;  %v2662_v9 = vpop.f32.mrf.mxu1  ;;  %v1812_v0 = vadd.f32 %v2627_v48, %v3908_v41  ;;  %v2645_v41 = vadd.f32 %v2644_v24, %v2643_v31  ;;  %v4253_v31 = vld [vmem:[#allocation34_spill] sm:$0xff] }
 0x28c   : > { %v3974_v56 = vpop.f32.mrf.mxu0 }
 0x28d   : > { %v3976_v11 = vpop.f32.mrf.mxu1  ;;  %v1909_v8 = vadd.f32 %v2691_v20, %v1812_v0  ;;  %v1836_v45 = vadd.f32 %v2645_v41, %v4252_v19  ;;  %v4254_v20 = vld [vmem:[#allocation35_spill] sm:$0xff]  ;;  %v2715_v0 = vadd.f32 %v4260_v38, %v4259_v14  ;;  %v2663_v41 = vadd.f32 %v2662_v9, %v2661_v16  ;;  %v4267_v19 = vld [vmem:[#allocation30_spill] sm:$0xff] }
 0x28e   : > { %v3978_v36 = vpop.f32.mrf.mxu0  ;;  %v2709_v24 = vadd.f32 %v4254_v20, %v4253_v31  ;;  %v4266_v47 = vld [vmem:[#allocation42_spill] sm:$0xff]  ;;  %v4034_v9 = vadd.f32 %v2718_v55, %v1847_v34 }
 0x28f   : > { %4249 = vst [vmem:[#allocation44_spill] sm:$0xff] %v3978_v36  ;;  %v2665_v32 = vpop.f32.mrf.mxu1  ;;  %v2697_v36 = vadd.f32 %v2696_v54, %v2695_v12  ;;  %v2703_v12 = vadd.f32 %v3948_v15, %v3946_v1  ;;  %v2657_v54 = vadd.f32 %v2656_v59, %v2655_v6  ;;  %v2712_v1 = vadd.f32 %v4257_v35, %v4256_v37  ;;  %v4263_v6 = vld [vmem:[#allocation28_spill] sm:$0xff]  ;;  %v4264_v59 = vld [vmem:[#allocation41_spill] sm:$0xff]  ;;  %v4269_v37 = vld [vmem:[#allocation31_spill] sm:$0xff] }
 0x290   : > { %v3983_v27 = vpop.f32.mrf.mxu0  ;;  %v2721_v43 = vadd.f32 %v2720_v22, %v4264_v59  ;;  %v2724_v10 = vadd.f32 %v2723_v61, %v4266_v47  ;;  %v1933_v22 = vadd.f32 %v2709_v24, %v1836_v45  ;;  %v1860_v31 = vadd.f32 %v2663_v41, %v4267_v19 }
 0x291   : > { %v2667_v42 = vpop.f32.mrf.mxu1  ;;  %v1917_v58 = vadd.f32 %v2697_v36, %v1820_v29  ;;  %v4258_v36 = vld [vmem:[#allocation26_spill] sm:$0xff]  ;;  %v1852_v30 = vadd.f32 %v2657_v54, %v4263_v6  ;;  %v1925_v29 = vadd.f32 %v2703_v12, %v1828_v40  ;;  %v2666_v40 = vadd.f32 %v2665_v32, %v3976_v11 }
 0x292   : > { %v3995_v26 = vpop.f32.mrf.mxu0  ;;  %v1844_v48 = vadd.f32 %v2651_v18, %v4258_v36  ;;  %v4028_v18 = vadd.f32 %v2706_v3, %v1831_v62  ;;  %v4043_v11 = vadd.f32 %v2724_v10, %v1855_v33  ;;  %v2197_v33 = vld [vmem:[#allocation2 + $0x20] sm:$0xff] }
 0x293   : > { %v2668_v5 = vpop.f32.mrf.mxu1  ;;  %v4038_v3 = vadd.f32 %v2721_v43, %v1852_v30 }
 0x294   : > { %v2732_v15 = vpop.f32.mrf.mxu0  ;;  %v2669_v12 = vadd.f32 %v2668_v5, %v2667_v42  ;;  %v4032_v61 = vadd.f32 %v2715_v0, %v1844_v48 }
 0x295   : > { %v2670_v39 = vpop.f32.mrf.mxu1 }
 0x296   : > { %v2734_v44 = vpop.f32.mrf.mxu0  ;;  %v4270_v35 = vld [vmem:[#allocation44_spill] sm:$0xff]  ;;  %v1868_v36 = vadd.f32 %v2669_v12, %v3990_v60 }
 0x297   : > { %v2671_v51 = vpop.f32.mrf.mxu1 }
 0x298   : > { %v2672_v20 = vadd.f32 %v2671_v51, %v2670_v39  ;;  %v2735_v42 = vpop.f32.mrf.mxu0 }
 0x299   : > { %v2807_v57 = vpop.f32.mrf.mxu1  ;;  %v2736_v53 = vadd.f32 %v2735_v42, %v2734_v44 }
 0x29a   : > { %v2014_v4 = vadd.f32 %v2807_v57, %v1917_v58  ;;  %v1936_v58 = vadd.f32 %v2712_v1, %v1839_v21  ;;  %v2730_v1 = vadd.f32 %v3983_v27, %v4270_v35  ;;  %v1871_v0 = vadd.f32 %v2672_v20, %v3993_v52 }
 0x29b   : > { %v2005_v63 = vpop.f32.mrf.mxu1 }
 0x29c   : > { %v2077_v54 = vmul.f32 %v4017_v25, %v2014_v4  ;;  %v2006_v2 = vadd.f32 %v2005_v63, %v1909_v8  ;;  %v4268_v8 = vld [vmem:[#allocation43_spill] sm:$0xff]  ;;  %v4065_v44 = vadd.f32 %v2736_v53, %v1871_v0 }
 0x29d   : > { %v2808_v23 = vpop.f32.mrf.mxu1  ;;  %v2727_v45 = vadd.f32 %v3974_v56, %v4268_v8  ;;  %v2733_v56 = vadd.f32 %v2732_v15, %v3995_v26 }
 0x29e   : > { %v2100_v16 = vadd.f32 %v4026_v49, %v2077_v54  ;;  %v2075_v28 = vmul.f32 %v4017_v25, %v2006_v2  ;;  %v2017_v62 = vadd.f32 %v2808_v23, %v1920_v17  ;;  %v1863_v17 = vadd.f32 %v2666_v40, %v4269_v37  ;;  %v2195_v40 = vld [vmem:[#allocation2 + $0x10] sm:$0xff] }
 0x29f   : > { %v2008_v32 = vpop.f32.mrf.mxu1  ;;  %v4055_v50 = vadd.f32 %v2727_v45, %v1860_v31  ;;  %v4059_v30 = vadd.f32 %v2733_v56, %v1868_v36  ;;  %v2198_v45 = vld [vmem:[#allocation2 + $0x28] sm:$0xff] }
 0x2a0   : > { %v2116_v5 = vadd.f32 3.0, %v2100_v16  ;;  %v2098_v24 = vadd.f32 %v4026_v49, %v2075_v28  ;;  %v2078_v46 = vmul.f32 %v4017_v25, %v2017_v62  ;;  %v2009_v21 = vadd.f32 %v2008_v32, %v1912_v7 }
 0x2a1   : > { %v2811_v39 = vpop.f32.mrf.mxu1  ;;  %v4061_v59 = vadd.f32 %v2730_v1, %v1863_v17  ;;  %v2196_v17 = vld [vmem:[#allocation2 + $0x18] sm:$0xff] }
 0x2a2   : > { %v2132_v51 = vmax.f32 %v2116_v5, 0.0  ;;  %v2114_v48 = vadd.f32 3.0, %v2098_v24  ;;  %v2101_v14 = vadd.f32 %v4026_v49, %v2078_v46  ;;  %v2076_v38 = vmul.f32 %v4017_v25, %v2009_v21 }
 0x2a3   : > { %v2030_v7 = vadd.f32 %v2811_v39, %v1933_v22  ;;  %v2021_v34 = vpop.f32.mrf.mxu1 }
 0x2a4   : > { %v2148_v55 = vmin.f32 %v2132_v51, 6.0  ;;  %v2130_v27 = vmax.f32 %v2114_v48, 0.0  ;;  %v2117_v57 = vadd.f32 3.0, %v2101_v14  ;;  %v2099_v60 = vadd.f32 %v4026_v49, %v2076_v38 }
 0x2a5   : > { %v2081_v26 = vmul.f32 %v4017_v25, %v2030_v7  ;;  %v2022_v15 = vadd.f32 %v2021_v34, %v1925_v29  ;;  %v2812_v6 = vpop.f32.mrf.mxu1 }
 0x2a6   : > { %v2164_v43 = vmul.f32 %v2148_v55, %v2100_v16  ;;  %v2146_v52 = vmin.f32 %v2130_v27, 6.0  ;;  %v2133_v4 = vmax.f32 %v2117_v57, 0.0  ;;  %v2115_v13 = vadd.f32 3.0, %v2099_v60  ;;  %v2201_v27 = vld [vmem:[#allocation2 + $0x40] sm:$0xff] }
 0x2a7   : > { %v2104_v47 = vadd.f32 %v4026_v49, %v2081_v26  ;;  %v2079_v10 = vmul.f32 %v4017_v25, %v2022_v15  ;;  %v2033_v41 = vadd.f32 %v2812_v6, %v1936_v58  ;;  %v2024_v63 = vpop.f32.mrf.mxu1 }
 0x2a8   : > { %v2180_v54 = vmul.f32 0.16666667, %v2164_v43  ;;  %v2162_v29 = vmul.f32 %v2146_v52, %v2098_v24  ;;  %v2149_v2 = vmin.f32 %v2133_v4, 6.0  ;;  %v2131_v22 = vmax.f32 %v2115_v13, 0.0  ;;  %v2199_v4 = vld [vmem:[#allocation2 + $0x30] sm:$0xff] }
 0x2a9   : > { %v2120_v12 = vadd.f32 3.0, %v2104_v47  ;;  %v2102_v23 = vadd.f32 %v4026_v49, %v2079_v10  ;;  %v2082_v16 = vmul.f32 %v4017_v25, %v2033_v41  ;;  %v2025_v28 = vadd.f32 %v2024_v63, %v4028_v18  ;;  %v2815_v62 = vpop.f32.mrf.mxu1 }
 0x2aa   : > { %v2213_v19 = vadd.f32 %v2197_v33, %v2180_v54  ;;  %v2178_v31 = vmul.f32 0.16666667, %v2162_v29  ;;  %v2165_v58 = vmul.f32 %v2149_v2, %v2101_v14  ;;  %v2147_v8 = vmin.f32 %v2131_v22, 6.0  ;;  %v2202_v2 = vld [vmem:[#allocation2 + $0x48] sm:$0xff] }
 0x2ab   : > { %v2136_v20 = vmax.f32 %v2120_v12, 0.0  ;;  %v2118_v32 = vadd.f32 3.0, %v2102_v23  ;;  %v2105_v42 = vadd.f32 %v4026_v49, %v2082_v16  ;;  %v2080_v5 = vmul.f32 %v4017_v25, %v2025_v28  ;;  %v2037_v24 = vpop.f32.mrf.mxu1 }
 0x2ac   : > { %2229 = vst [vmem:[%s3420_s23 + $0x10] sm:$0xff] %v2213_v19  ;;  %v2211_v46 = vadd.f32 %v2195_v40, %v2178_v31  ;;  %v2181_v21 = vmul.f32 0.16666667, %v2165_v58  ;;  %v2163_v37 = vmul.f32 %v2147_v8, %v2099_v60  ;;  %v2046_v18 = vadd.f32 %v2815_v62, %v4038_v3  ;;  %v2200_v31 = vld [vmem:[#allocation2 + $0x38] sm:$0xff] }
 0x2ad   : > { %v2152_v35 = vmin.f32 %v2136_v20, 6.0  ;;  %v2134_v1 = vmax.f32 %v2118_v32, 0.0  ;;  %v2121_v36 = vadd.f32 3.0, %v2105_v42  ;;  %v2103_v56 = vadd.f32 %v4026_v49, %v2080_v5  ;;  %v2816_v39 = vpop.f32.mrf.mxu1 }
 0x2ae   : > { %2227 = vst [vmem:[%s3420_s23] sm:$0xff] %v2211_v46  ;;  %v2214_v51 = vadd.f32 %v2198_v45, %v2181_v21  ;;  %v2179_v48 = vmul.f32 0.16666667, %v2163_v37  ;;  %v2085_v14 = vmul.f32 %v4017_v25, %v2046_v18  ;;  %v2038_v38 = vadd.f32 %v2037_v24, %v4032_v61 }
 0x2af   : > { %v2168_v0 = vmul.f32 %v2152_v35, %v2104_v47  ;;  %v2150_v53 = vmin.f32 %v2134_v1, 6.0  ;;  %v2137_v7 = vmax.f32 %v2121_v36, 0.0  ;;  %v2119_v3 = vadd.f32 3.0, %v2103_v56  ;;  %v2040_v34 = vpop.f32.mrf.mxu1  ;;  %v2205_v35 = vld [vmem:[#allocation2 + $0x60] sm:$0xff] }
 0x2b0   : > { %2230 = vst [vmem:[%s3420_s23 + $0x18] sm:$0xff] %v2214_v51  ;;  %v2212_v55 = vadd.f32 %v2196_v17, %v2179_v48  ;;  %v2108_v57 = vadd.f32 %v4026_v49, %v2085_v14  ;;  %v2083_v60 = vmul.f32 %v4017_v25, %v2038_v38  ;;  %v2049_v26 = vadd.f32 %v2816_v39, %v4043_v11 }
 0x2b1   : > { %v2184_v15 = vmul.f32 0.16666667, %v2168_v0  ;;  %v2166_v6 = vmul.f32 %v2150_v53, %v2102_v23  ;;  %v2153_v43 = vmin.f32 %v2137_v7, 6.0  ;;  %v2135_v52 = vmax.f32 %v2119_v3, 0.0  ;;  %v2819_v61 = vpop.f32.mrf.mxu1 }
 0x2b2   : > { %2228 = vst [vmem:[%s3420_s23 + $0x8] sm:$0xff] %v2212_v55  ;;  %v2124_v13 = vadd.f32 3.0, %v2108_v57  ;;  %v2106_v33 = vadd.f32 %v4026_v49, %v2083_v60  ;;  %v2086_v47 = vmul.f32 %v4017_v25, %v2049_v26  ;;  %v2041_v10 = vadd.f32 %v2040_v34, %v4034_v9 }
 0x2b3   : > { %v2217_v41 = vadd.f32 %v2201_v27, %v2184_v15  ;;  %v2182_v63 = vmul.f32 0.16666667, %v2166_v6  ;;  %v2169_v54 = vmul.f32 %v2153_v43, %v2105_v42  ;;  %v2151_v29 = vmin.f32 %v2135_v52, 6.0  ;;  %v2053_v11 = vpop.f32.mrf.mxu1 }
 0x2b4   : > { %v2140_v22 = vmax.f32 %v2124_v13, 0.0  ;;  %v2122_v40 = vadd.f32 3.0, %v2106_v33  ;;  %v2109_v12 = vadd.f32 %v4026_v49, %v2086_v47  ;;  %v2084_v23 = vmul.f32 %v4017_v25, %v2041_v10 }
 0x2b5   : > { %2233 = vst [vmem:[%s3420_s23 + $0x30] sm:$0xff] %v2217_v41  ;;  %v2215_v16 = vadd.f32 %v2199_v4, %v2182_v63  ;;  %v2185_v28 = vmul.f32 0.16666667, %v2169_v54  ;;  %v2167_v62 = vmul.f32 %v2151_v29, %v2103_v56  ;;  %v2062_v19 = vadd.f32 %v2819_v61, %v4059_v30  ;;  %v2820_v9 = vpop.f32.mrf.mxu1  ;;  %v2204_v61 = vld [vmem:[#allocation2 + $0x58] sm:$0xff] }
 0x2b6   : > { %v2156_v58 = vmin.f32 %v2140_v22, 6.0  ;;  %v2138_v8 = vmax.f32 %v2122_v40, 0.0  ;;  %v2125_v45 = vadd.f32 3.0, %v2109_v12  ;;  %v2107_v20 = vadd.f32 %v4026_v49, %v2084_v23 }
 0x2b7   : > { %2231 = vst [vmem:[%s3420_s23 + $0x20] sm:$0xff] %v2215_v16  ;;  %v2218_v32 = vadd.f32 %v2202_v2, %v2185_v28  ;;  %v2183_v42 = vmul.f32 0.16666667, %v2167_v62  ;;  %v2089_v5 = vmul.f32 %v4017_v25, %v2062_v19  ;;  %v2054_v24 = vadd.f32 %v2053_v11, %v4055_v50  ;;  %v2056_v18 = vpop.f32.mrf.mxu1  ;;  %v2203_v50 = vld [vmem:[#allocation2 + $0x50] sm:$0xff]  ;;  %v2209_v11 = vld [vmem:[#allocation2 + $0x80] sm:$0xff]  ;;  %v2210_v19 = vld [vmem:[#allocation2 + $0x88] sm:$0xff] }
 0x2b8   : > { %v2172_v46 = vmul.f32 %v2156_v58, %v2108_v57  ;;  %v2154_v21 = vmin.f32 %v2138_v8, 6.0  ;;  %v2141_v37 = vmax.f32 %v2125_v45, 0.0  ;;  %v2123_v30 = vadd.f32 3.0, %v2107_v20  ;;  %v2208_v8 = vld [vmem:[#allocation2 + $0x78] sm:$0xff] }
 0x2b9   : > { %2234 = vst [vmem:[%s3420_s23 + $0x38] sm:$0xff] %v2218_v32  ;;  %v2216_v17 = vadd.f32 %v2200_v31, %v2183_v42  ;;  %v2112_v1 = vadd.f32 %v4026_v49, %v2089_v5  ;;  %v2087_v36 = vmul.f32 %v4017_v25, %v2054_v24  ;;  %v2065_v56 = vadd.f32 %v2820_v9, %v4065_v44  ;;  %v2206_v44 = vld [vmem:[#allocation2 + $0x68] sm:$0xff] }
 0x2ba   : > { %v2188_v39 = vmul.f32 0.16666667, %v2172_v46  ;;  %v2170_v51 = vmul.f32 %v2154_v21, %v2106_v33  ;;  %v2157_v48 = vmin.f32 %v2141_v37, 6.0  ;;  %v2139_v14 = vmax.f32 %v2123_v30, 0.0 }
 0x2bb   : > { %2232 = vst [vmem:[%s3420_s23 + $0x28] sm:$0xff] %v2216_v17  ;;  %v2128_v38 = vadd.f32 3.0, %v2112_v1  ;;  %v2110_v0 = vadd.f32 %v4026_v49, %v2087_v36  ;;  %v2090_v53 = vmul.f32 %v4017_v25, %v2065_v56  ;;  %v2057_v7 = vadd.f32 %v2056_v18, %v4061_v59 }
 0x2bc   : > { %v2221_v3 = vadd.f32 %v2205_v35, %v2188_v39  ;;  %v2186_v34 = vmul.f32 0.16666667, %v2170_v51  ;;  %v2173_v55 = vmul.f32 %v2157_v48, %v2109_v12  ;;  %v2155_v27 = vmin.f32 %v2139_v14, 6.0 }
 0x2bd   : > { %v2144_v57 = vmax.f32 %v2128_v38, 0.0  ;;  %v2126_v60 = vadd.f32 3.0, %v2110_v0  ;;  %v2113_v26 = vadd.f32 %v4026_v49, %v2090_v53  ;;  %v2088_v15 = vmul.f32 %v4017_v25, %v2057_v7 }
 0x2be   : > { %2237 = vst [vmem:[%s3420_s23 + $0x50] sm:$0xff] %v2221_v3  ;;  %v2219_v6 = vadd.f32 %v2203_v50, %v2186_v34  ;;  %v2189_v43 = vmul.f32 0.16666667, %v2173_v55  ;;  %v2171_v52 = vmul.f32 %v2155_v27, %v2107_v20 }
 0x2bf   : > { %v2160_v59 = vmin.f32 %v2144_v57, 6.0  ;;  %v2142_v4 = vmax.f32 %v2126_v60, 0.0  ;;  %v2129_v13 = vadd.f32 3.0, %v2113_v26  ;;  %v2111_v33 = vadd.f32 %v4026_v49, %v2088_v15  ;;  %v2207_v49 = vld [vmem:[#allocation2 + $0x70] sm:$0xff] }
 0x2c0   : > { %2235 = vst [vmem:[%s3420_s23 + $0x40] sm:$0xff] %v2219_v6  ;;  %v2222_v47 = vadd.f32 %v2206_v44, %v2189_v43  ;;  %v2187_v10 = vmul.f32 0.16666667, %v2171_v52 }
 0x2c1   : > { %v2176_v41 = vmul.f32 %v2160_v59, %v2112_v1  ;;  %v2158_v63 = vmin.f32 %v2142_v4, 6.0  ;;  %v2145_v25 = vmax.f32 %v2129_v13, 0.0  ;;  %v2127_v54 = vadd.f32 3.0, %v2111_v33 }
 0x2c2   : > { %2238 = vst [vmem:[%s3420_s23 + $0x58] sm:$0xff] %v2222_v47  ;;  %v2220_v29 = vadd.f32 %v2204_v61, %v2187_v10 }
 0x2c3   : > { %v2192_v2 = vmul.f32 0.16666667, %v2176_v41  ;;  %v2174_v22 = vmul.f32 %v2158_v63, %v2110_v0  ;;  %v2161_v40 = vmin.f32 %v2145_v25, 6.0  ;;  %v2143_v12 = vmax.f32 %v2127_v54, 0.0 }
 0x2c4   : > { %2236 = vst [vmem:[%s3420_s23 + $0x48] sm:$0xff] %v2220_v29 }
 0x2c5   : > { %v2225_v23 = vadd.f32 %v2209_v11, %v2192_v2  ;;  %v2190_v16 = vmul.f32 0.16666667, %v2174_v22  ;;  %v2177_v28 = vmul.f32 %v2161_v40, %v2113_v26  ;;  %v2159_v62 = vmin.f32 %v2143_v12, 6.0 }
 0x2c7   : > { %2241 = vst [vmem:[%s3420_s23 + $0x70] sm:$0xff] %v2225_v23  ;;  %v2223_v9 = vadd.f32 %v2207_v49, %v2190_v16  ;;  %v2193_v31 = vmul.f32 0.16666667, %v2177_v28  ;;  %v2175_v58 = vmul.f32 %v2159_v62, %v2111_v33 }
 0x2c9   : > { %2239 = vst [vmem:[%s3420_s23 + $0x60] sm:$0xff] %v2223_v9  ;;  %v2226_v45 = vadd.f32 %v2210_v19, %v2193_v31  ;;  %v2191_v20 = vmul.f32 0.16666667, %v2175_v58 }
 0x2cb   : > { %2242 = vst [vmem:[%s3420_s23 + $0x78] sm:$0xff] %v2226_v45  ;;  %v2224_v32 = vadd.f32 %v2208_v8, %v2191_v20 }
 0x2cd   : > { %2240 = vst [vmem:[%s3420_s23 + $0x68] sm:$0xff] %v2224_v32 }
 0x2ce   : > { %3149 = shalt.err (!%p3146_p11)
}
 0x2cf   : > { %s3150_s30 = scalar_lea.hbm %s4120_s19, 2048  ;;  %s3154_s10 = scalar_lea.hbm %s4183_s7, 8192 }
 0x2d0   : > { %p3151_p13 = scmp.ne.s32.totalorder %s4120_s19, %s3150_s30  ;;  %p3155_p5 = scmp.lt.s32.totalorder %s4120_s19, %s4183_s7 }
 0x2d1   : > { %p3156_p6 = scmp.lt.s32.totalorder %s3154_s10, %s3150_s30 }
 0x2d2   : > { %p3152_p2 = pnand %p3151_p13, %p3342_p3 }
 0x2d3   : > { %p3157_p7 = por %p3156_p6, %p3155_p5 }
 0x2d4   : > { %p3153_p4 = pneg %p3152_p2 }
 0x2d6   : > { %p3158_p9 = pnand %p3157_p7, %p3153_p4 }
 0x2d8   : > { %3161 = shalt.err (!%p3158_p9)
}
 0x2d9   : > { %s3248_s17 = smov 128   ;;  %s3249_s18 = smov 8  }
 0x2da   : > { %2829 = dma.vmem_to_hbm [thread:$0]  (%p3342_p3), %s4114_s27, 2048, %s4120_s19, %s4125_s1, %s3248_s17, %s3248_s17, %s3249_s18  }
 0x2db PF: > { %p2846_p10 = scmp.ge.s32.totalorder %s3238_s8, 2  ;;  %s2275_s22 = sand.u32 1, %s3210_s24  }
 0x2dc   : > { %s2276_s28 = scalar_lea.sflag [#allocation7], %s2275_s22 }
 0x2dd   : > { %p2839_p12 = pnand %p2846_p10, %p3351_p8 }
 0x2df   : > { %p2840_p0 = pneg %p2839_p12 }
 0x2e1   : > { %3205 = dma.done.wait (%p2840_p0), %s2276_s28, 2048  }
 0x2e2   : > { %3207 = vsyncadd (%p2840_p0), %s2276_s28, 4294965248  ;;  %s22_s8 = sadd.s32 1, %s3238_s8   ;;  %s4271_s20 = sld [smem:[#allocation23_spill]] }
 0x2e3   : > { %p19_p1 = scmp.ge.s32.totalorder %s22_s8, 6   ;;  %s4272_s27 = sld [smem:[#allocation19_spill]] }
 0x2e4   : > { %s4273_s28 = sld [smem:[#allocation20_spill]]  ;;  %s4276_s24 = smov %s3214_s25 }
 0x2e5   : > { %s4274_s29 = sld [smem:[#allocation21_spill]]  ;;  %s4277_s25 = smov %s3218_s26 }
 0x2e6   : > { %s4275_s30 = sld [smem:[#allocation22_spill]]  ;;  %21 = sbr.rel (!%p19_p1) target bundleno = 10 (0xa), region = 93 }
 0x2e8   : > { %s4278_s26 = smov %s4271_s20 }
 0x2eb   :  { %2281 = vsyncpa [#allocation6], 1 }
 0x2ec   :  { %2283 = vsyncpa [#allocation6 + $0x1], 1 }
 0x2ed   :  { %2284 = vsyncpa [#allocation9], 1 }
 0x2ee   :  { %2285 = vsyncpa [#allocation7], 1 }
 0x2ef   :  { %2287 = vsyncpa [#allocation7 + $0x1], 1 }
 0x2f0   :  { %2288 = vsyncmov [#allocation4] }
 0x2f3   :  { %s2289_s15 = vpop.sfrf %2288 }
 0x2f4   :  { %p2460_p3 = scmp.ne.s32.totalorder %s2289_s15, 0 }
 0x2f6   :  { %2293 = shalt.err (%p2460_p3)  }

</bundles_post_ra>
